<compile_context>
chip_gen: v6e
topology: v6e:2x2x1
jax: 0.10.0
libtpu: 0.0.40
codegen_flags: <defaults>
</compile_context>

<pallas_src>
import functools

import jax
import jax.numpy as jnp
from jax.experimental import pallas as pl
from jax.experimental.pallas import tpu as pltpu

# ---- module hyper-parameters (from CondAffineCondZTrCmid18Ablation.__init__) ----
IN_CHANNELS = 4
IN_CHANNELS_RRDB = 320
CHANNELS_MIDDLE = 18
HIDDEN_CHANNELS = 64
AFFINE_EPS = 1e-4
N_BYPASS = IN_CHANNELS // 2              # 2
N_TRANSFORM = IN_CHANNELS - N_BYPASS     # 2

PARAM_ORDER = ("w_fpre", "b_fpre",
               "w_z1", "b_z1", "w_z2", "b_z2",
               "w_z3s", "b_z3s", "w_z3c", "b_z3c",
               "w_f1", "b_f1", "w_f2", "b_f2",
               "w_f3s", "b_f3s", "w_f3c", "b_f3c")


# ----------------------------- Pallas kernel ---------------------------------
def _coupling_kernel(z_ref, ft_ref,
                     wpre_ref, bpre_ref,
                     wz1_ref, bz1_ref, wz2_ref, bz2_ref,
                     wz3s_ref, bz3s_ref, wz3c_ref, bz3c_ref,
                     wf1_ref, bf1_ref, wf2_ref, bf2_ref,
                     wf3s_ref, bf3s_ref, wf3c_ref, bf3c_ref,
                     zo_ref, ld_ref, lacc_ref, *, reverse: bool):
    t = pl.program_id(2)
    n_t = pl.num_programs(2)
    f32 = jnp.float32
    bf16 = jnp.bfloat16

    # per-lane logdet partials live across the pixel-tile (reduction) axis
    @pl.when(t == 0)
    def _():
        lacc_ref[...] = jnp.zeros_like(lacc_ref)

    z = z_ref[0]                               # (C, TILE) f32
    ft = ft_ref[0].astype(bf16)                # (320, TILE) bf16 (no-op if bf16)
    zb = z[:N_BYPASS, :]                       # (2, TILE) f32, bypass passthrough
    zt = z[N_BYPASS:, :]                       # (2, TILE) f32

    def mm(w_ref, x16, b_ref):
        # bf16 x bf16 MXU matmul, f32 accumulation, f32 bias add
        return jnp.dot(w_ref[...], x16, preferred_element_type=f32) + b_ref[...]

    # f_fpre: 1x1 conv 320 -> 18 (dominant HBM/MXU cost)
    ft_prep = mm(wpre_ref, ft, bpre_ref)

    # f_z(z_bypass): conv-relu-conv-relu-convZeros, all on the MXU.
    # 'cross' (even/odd channel) split is folded into separate shift/scale
    # weight matrices in the wrapper -> two aligned dots, no lane slicing.
    h = jnp.maximum(mm(wz1_ref, zb.astype(bf16), bz1_ref), 0.0)
    h = jnp.maximum(mm(wz2_ref, h.astype(bf16), bz2_ref), 0.0)
    h16 = h.astype(bf16)
    shift_ft = mm(wz3s_ref, h16, bz3s_ref)
    # sigmoid(x + 2): the +2 is folded into bz3c; reciprocal on the EUP slot
    scale_ft = pl.reciprocal(1.0 + jnp.exp(-mm(wz3c_ref, h16, bz3c_ref)),
                             approx=True) + AFFINE_EPS

    # ft_trans = affine(ft_prep, scale_ft, shift_ft, reverse=False)
    ft_trans = ((ft_prep + shift_ft) * scale_ft).astype(bf16)

    # f_f(ft_trans)
    g = jnp.maximum(mm(wf1_ref, ft_trans, bf1_ref), 0.0)
    g = jnp.maximum(mm(wf2_ref, g.astype(bf16), bf2_ref), 0.0)
    g16 = g.astype(bf16)
    shift = mm(wf3s_ref, g16, bf3s_ref)
    # exact divide here: `scale` feeds the logdet sum over every pixel, so an
    # approximate-reciprocal bias would accumulate across H*W.
    scale = 1.0 / (1.0 + jnp.exp(-mm(wf3c_ref, g16, bf3c_ref))) + AFFINE_EPS

    # accumulate per-lane log|scale| partials; cross-lane reduce only at the end
    lacc_ref[...] += jnp.log(scale)

    if not reverse:
        zt_out = (zt + shift) * scale
        sign = 1.0
    else:
        zt_out = zt * pl.reciprocal(scale, approx=True) - shift
        sign = -1.0

    # two slice stores, no concatenate
    zo_ref[0, :N_BYPASS, :] = zb
    zo_ref[0, N_BYPASS:, :] = zt_out

    @pl.when(t == n_t - 1)
    def _():
        ld_ref[...] = jnp.broadcast_to(sign * jnp.sum(lacc_ref[...]), ld_ref.shape)


# ------------------------------ JAX wrapper -----------------------------------
def _pick_tiling(hw, *, ft_itemsize=2, max_tile=8192,
                 vmem_budget=24 * 1024 * 1024, min_split=1024):
    """Largest multiple-of-128 divisor of H*W that fits the VMEM budget, plus a
    2-way pixel-block split so both v7x TensorCores run at small batch."""
    assert hw % 128 == 0, "H*W must be a multiple of 128"

    def tile_bytes(t):
        # double-buffered streamed blocks + rough peak of in-kernel intermediates
        ft_b = 2 * IN_CHANNELS_RRDB * t * ft_itemsize
        z_b = 2 * 2 * IN_CHANNELS * t * 4
        inter = (3 * HIDDEN_CHANNELS + 5 * CHANNELS_MIDDLE + 3 * N_TRANSFORM) * t * 4
        return ft_b + z_b + inter

    tile = 128
    d = 128
    while d <= min(max_tile, hw):
        if hw % d == 0 and tile_bytes(d) <= vmem_budget:
            tile = d
        d += 128
    n_tiles = hw // tile

    if n_tiles % 2 == 0:
        n_blocks = 2
    elif n_tiles == 1 and tile % 256 == 0 and tile // 2 >= min_split:
        tile //= 2
        n_tiles = 2
        n_blocks = 2
    else:
        n_blocks = 1
    return tile, n_blocks, n_tiles // n_blocks


def cond_affine_coupling(z, ft, logdet, params, *, reverse=False, max_tile=8192):
    N, C, H, W = z.shape
    assert C == IN_CHANNELS
    Cr = ft.shape[1]
    assert Cr == IN_CHANNELS_RRDB
    HW = H * W
    tile, n_blocks, tpb = _pick_tiling(
        HW, ft_itemsize=jnp.dtype(ft.dtype).itemsize, max_tile=max_tile)

    # NCHW -> (N, C, H*W): pure reshape, no transpose / extra HBM pass.
    z_p = z.reshape(N, C, HW).astype(jnp.float32)
    # ft is streamed in its native dtype (keep it bf16 upstream when possible);
    # the kernel casts to bf16 right before the fpre matmul -> no wrapper cast.
    ft_p = ft.reshape(N, Cr, HW)

    weights = []
    for k in PARAM_ORDER:
        w = params[k]
        if k in ("b_z3c", "b_f3c"):
            w = w + 2.0                        # fold sigmoid's +2.0 into the bias
        if k.startswith("w_"):
            w = w.astype(jnp.bfloat16)         # bf16 MXU path for all matmuls
        weights.append(w)

    def data_spec(c):
        return pl.BlockSpec((1, c, tile), lambda n, b, t: (n, 0, b * tpb + t))

    def w_spec(shp):
        return pl.BlockSpec(shp, lambda n, b, t: (0,) * len(shp))

    in_specs = [data_spec(C), data_spec(Cr)]
    in_specs += [w_spec(w.shape) for w in weights]

    out_shape = (jax.ShapeDtypeStruct((N, C, HW), jnp.float32),
                 jax.ShapeDtypeStruct((N, n_blocks, 8, 128), jnp.float32))
    out_specs = [pl.BlockSpec((1, C, tile), lambda n, b, t: (n, 0, b * tpb + t)),
                 pl.BlockSpec((1, 1, 8, 128), lambda n, b, t: (n, b, 0, 0))]

    kernel = functools.partial(_coupling_kernel, reverse=reverse)
    z_out_p, ld_part = pl.pallas_call(
        kernel,
        out_shape=out_shape,
        grid_spec=pltpu.PrefetchScalarGridSpec(
            num_scalar_prefetch=0,
            grid=(N, n_blocks, tpb),
            in_specs=in_specs,
            out_specs=out_specs,
            scratch_shapes=[pltpu.VMEM((N_TRANSFORM, tile), jnp.float32)]),
        compiler_params=pltpu.CompilerParams(
            dimension_semantics=("parallel", "parallel", "arbitrary"),
            vmem_limit_bytes=32 * 1024 * 1024),
    )(z_p, ft_p, *weights)

    z_out = z_out_p.reshape(N, C, H, W)
    logdet_out = logdet + jnp.sum(ld_part[:, :, 0, 0], axis=1)
    return z_out, logdet_out


# --------------------------- parameter construction ---------------------------
def init_params(key):
    ks = jax.random.split(key, 12)

    def w(k, cout, cin, std=0.05):
        return std * jax.random.normal(k, (cout, cin), jnp.float32)

    def b(k, cout, std=0.01):
        return std * jax.random.normal(k, (cout, 1), jnp.float32)

    p = {}
    # f_fpre: Conv2d(320 -> 18, kernel [1,1])
    p["w_fpre"] = w(ks[0], CHANNELS_MIDDLE, IN_CHANNELS_RRDB)
    p["b_fpre"] = jnp.zeros((CHANNELS_MIDDLE, 1), jnp.float32)

    # f_z: Conv2d(2->64) ReLU Conv2d(64->64,[1,1]) ReLU Conv2dZeros(64->36)
    p["w_z1"] = w(ks[1], HIDDEN_CHANNELS, N_BYPASS)
    p["b_z1"] = b(ks[2], HIDDEN_CHANNELS)
    p["w_z2"] = w(ks[3], HIDDEN_CHANNELS, HIDDEN_CHANNELS)
    p["b_z2"] = b(ks[4], HIDDEN_CHANNELS)
    wz3 = 0.02 * jax.random.normal(ks[5], (2 * CHANNELS_MIDDLE, HIDDEN_CHANNELS), jnp.float32)
    bz3 = 0.02 * jax.random.normal(ks[6], (2 * CHANNELS_MIDDLE, 1), jnp.float32)
    # thops.split_feature(h, 'cross'): shift = out chans 0::2, scale = 1::2
    p["w_z3s"], p["b_z3s"] = wz3[0::2], bz3[0::2]
    p["w_z3c"], p["b_z3c"] = wz3[1::2], bz3[1::2]

    # f_f: Conv2d(18->64) ReLU Conv2d(64->64,[1,1]) ReLU Conv2dZeros(64->4)
    p["w_f1"] = w(ks[7], HIDDEN_CHANNELS, CHANNELS_MIDDLE)
    p["b_f1"] = b(ks[8], HIDDEN_CHANNELS)
    p["w_f2"] = w(ks[9], HIDDEN_CHANNELS, HIDDEN_CHANNELS)
    p["b_f2"] = b(ks[10], HIDDEN_CHANNELS)
    wf3 = 0.02 * jax.random.normal(ks[11], (2 * N_TRANSFORM, HIDDEN_CHANNELS), jnp.float32)
    bf3 = jnp.zeros((2 * N_TRANSFORM, 1), jnp.float32)
    p["w_f3s"], p["b_f3s"] = wf3[0::2], bf3[0::2]
    p["w_f3c"], p["b_f3c"] = wf3[1::2], bf3[1::2]
    return p


# ------------------------------ pure-JAX reference -----------------------------
def reference(z, ft, logdet, p, *, reverse=False):
    """Mirrors the kernel's bf16 storage/matmul casts so tolerances stay tight."""
    N, C, H, W = z.shape
    HW = H * W
    f32, bf16 = jnp.float32, jnp.bfloat16
    z_p = z.reshape(N, C, HW).astype(f32)
    ft_p = ft.reshape(N, IN_CHANNELS_RRDB, HW)

    zb, zt = z_p[:, :N_BYPASS], z_p[:, N_BYPASS:]

    def conv(wm, x, bm):
        return jnp.einsum("oc,ncp->nop", wm.astype(bf16), x.astype(bf16),
                          preferred_element_type=f32) + bm

    ft_prep = conv(p["w_fpre"], ft_p, p["b_fpre"])
    h = jax.nn.relu(conv(p["w_z1"], zb, p["b_z1"]))
    h = jax.nn.relu(conv(p["w_z2"], h, p["b_z2"]))
    shift_ft = conv(p["w_z3s"], h, p["b_z3s"])
    scale_ft = 1.0 / (1.0 + jnp.exp(-(conv(p["w_z3c"], h, p["b_z3c"]) + 2.0))) + AFFINE_EPS
    ft_trans = (ft_prep + shift_ft) * scale_ft

    g = jax.nn.relu(conv(p["w_f1"], ft_trans, p["b_f1"]))
    g = jax.nn.relu(conv(p["w_f2"], g, p["b_f2"]))
    shift = conv(p["w_f3s"], g, p["b_f3s"])
    scale = 1.0 / (1.0 + jnp.exp(-(conv(p["w_f3c"], g, p["b_f3c"]) + 2.0))) + AFFINE_EPS

    ld = jnp.log(scale).reshape(N, -1).sum(-1)
    if not reverse:
        zt_out = (zt + shift) * scale
        logdet_out = logdet + ld
    else:
        zt_out = zt / scale - shift
        logdet_out = logdet - ld

    z_out = jnp.concatenate([zb, zt_out], axis=1).reshape(N, C, H, W)
    return z_out, logdet_out


# ----------------------------------- main --------------------------------------
if __name__ == "__main__":
    key = jax.random.PRNGKey(0)
    kz, kf, kp = jax.random.split(key, 3)

    N, C, H, W = 2, IN_CHANNELS, 16, 16
    z = jax.random.normal(kz, (N, C, H, W), jnp.float32)
    # ft kept bf16 end-to-end: the kernel streams it once, no wrapper cast pass.
    ft = jax.random.normal(kf, (N, IN_CHANNELS_RRDB, H, W), jnp.float32).astype(jnp.bfloat16)
    logdet = jnp.zeros((N,), jnp.float32)
    params = init_params(kp)

    z_out, ld_out = cond_affine_coupling(z, ft, logdet, params, reverse=False)
    jax.block_until_ready((z_out, ld_out))

    z_ref, ld_ref = reference(z, ft, logdet, params, reverse=False)
    assert z_out.shape == (N, C, H, W) and ld_out.shape == (N,)
    assert jnp.allclose(z_out, z_ref, rtol=2e-3, atol=2e-3), "z mismatch"
    assert jnp.allclose(ld_out, ld_ref, rtol=2e-3, atol=5e-2), "logdet mismatch"

    print("KERNEL_OK")
</pallas_src>

<mosaic_0001>
module attributes {stable_mosaic.version = 11 : i64} {
  func.func @_coupling_kernel(%arg0: i32, %arg1: i32, %arg2: i32, %arg3: memref<1x4x256xf32, #tpu.memory_space<vmem>>, %arg4: memref<1x320x256xbf16, #tpu.memory_space<vmem>>, %arg5: memref<18x320xbf16, #tpu.memory_space<vmem>>, %arg6: memref<18x1xf32, #tpu.memory_space<vmem>>, %arg7: memref<64x2xbf16, #tpu.memory_space<vmem>>, %arg8: memref<64x1xf32, #tpu.memory_space<vmem>>, %arg9: memref<64x64xbf16, #tpu.memory_space<vmem>>, %arg10: memref<64x1xf32, #tpu.memory_space<vmem>>, %arg11: memref<18x64xbf16, #tpu.memory_space<vmem>>, %arg12: memref<18x1xf32, #tpu.memory_space<vmem>>, %arg13: memref<18x64xbf16, #tpu.memory_space<vmem>>, %arg14: memref<18x1xf32, #tpu.memory_space<vmem>>, %arg15: memref<64x18xbf16, #tpu.memory_space<vmem>>, %arg16: memref<64x1xf32, #tpu.memory_space<vmem>>, %arg17: memref<64x64xbf16, #tpu.memory_space<vmem>>, %arg18: memref<64x1xf32, #tpu.memory_space<vmem>>, %arg19: memref<2x64xbf16, #tpu.memory_space<vmem>>, %arg20: memref<2x1xf32, #tpu.memory_space<vmem>>, %arg21: memref<2x64xbf16, #tpu.memory_space<vmem>>, %arg22: memref<2x1xf32, #tpu.memory_space<vmem>>, %arg23: memref<1x4x256xf32, #tpu.memory_space<vmem>>, %arg24: memref<1x1x8x128xf32, #tpu.memory_space<vmem>>, %arg25: memref<2x256xf32, #tpu.memory_space<vmem>>) attributes {dimension_semantics = [#tpu.dimension_semantics<parallel>, #tpu.dimension_semantics<parallel>, #tpu.dimension_semantics<arbitrary>], iteration_bounds = array<i64: 2, 1, 1>, scalar_prefetch = 0 : i64, scratch_operands = 1 : i64, tpu.core_type = #tpu.core_type<tc>, window_params = [{transform_indices = @transform_0, window_bounds = array<i64: 1, 4, 256>}, {transform_indices = @transform_1, window_bounds = array<i64: 1, 320, 256>}, {pipeline_mode = #tpu.pipeline_mode<synchronous>, transform_indices = @transform_2, window_bounds = array<i64: 18, 320>}, {pipeline_mode = #tpu.pipeline_mode<synchronous>, transform_indices = @transform_3, window_bounds = array<i64: 18, 1>}, {pipeline_mode = #tpu.pipeline_mode<synchronous>, transform_indices = @transform_4, window_bounds = array<i64: 64, 2>}, {pipeline_mode = #tpu.pipeline_mode<synchronous>, transform_indices = @transform_5, window_bounds = array<i64: 64, 1>}, {pipeline_mode = #tpu.pipeline_mode<synchronous>, transform_indices = @transform_6, window_bounds = array<i64: 64, 64>}, {pipeline_mode = #tpu.pipeline_mode<synchronous>, transform_indices = @transform_7, window_bounds = array<i64: 64, 1>}, {pipeline_mode = #tpu.pipeline_mode<synchronous>, transform_indices = @transform_8, window_bounds = array<i64: 18, 64>}, {pipeline_mode = #tpu.pipeline_mode<synchronous>, transform_indices = @transform_9, window_bounds = array<i64: 18, 1>}, {pipeline_mode = #tpu.pipeline_mode<synchronous>, transform_indices = @transform_10, window_bounds = array<i64: 18, 64>}, {pipeline_mode = #tpu.pipeline_mode<synchronous>, transform_indices = @transform_11, window_bounds = array<i64: 18, 1>}, {pipeline_mode = #tpu.pipeline_mode<synchronous>, transform_indices = @transform_12, window_bounds = array<i64: 64, 18>}, {pipeline_mode = #tpu.pipeline_mode<synchronous>, transform_indices = @transform_13, window_bounds = array<i64: 64, 1>}, {pipeline_mode = #tpu.pipeline_mode<synchronous>, transform_indices = @transform_14, window_bounds = array<i64: 64, 64>}, {pipeline_mode = #tpu.pipeline_mode<synchronous>, transform_indices = @transform_15, window_bounds = array<i64: 64, 1>}, {pipeline_mode = #tpu.pipeline_mode<synchronous>, transform_indices = @transform_16, window_bounds = array<i64: 2, 64>}, {pipeline_mode = #tpu.pipeline_mode<synchronous>, transform_indices = @transform_17, window_bounds = array<i64: 2, 1>}, {pipeline_mode = #tpu.pipeline_mode<synchronous>, transform_indices = @transform_18, window_bounds = array<i64: 2, 64>}, {pipeline_mode = #tpu.pipeline_mode<synchronous>, transform_indices = @transform_19, window_bounds = array<i64: 2, 1>}, {transform_indices = @transform_20, window_bounds = array<i64: 1, 4, 256>}, {transform_indices = @transform_21, window_bounds = array<i64: 1, 1, 8, 128>}]} {
    %c0_i32 = arith.constant 0 : i32
    %0 = arith.cmpi eq, %arg2, %c0_i32 : i32
    %1 = arith.extui %0 : i1 to i32
    %c0_i32_0 = arith.constant 0 : i32
    %2 = arith.cmpi ne, %1, %c0_i32_0 : i32
    scf.if %2 {
      %cst_72 = arith.constant 0.000000e+00 : f32
      %102 = vector.broadcast %cst_72 : f32 to vector<2x256xf32>
      %c0_73 = arith.constant 0 : index
      %c0_74 = arith.constant 0 : index
      %103 = vector.load %arg25[%c0_73, %c0_74] : memref<2x256xf32, #tpu.memory_space<vmem>>, vector<2x256xf32>
      tpu.vector_store %arg25[%c0_73, %c0_74], %102 {strides = array<i32>} : memref<2x256xf32, #tpu.memory_space<vmem>>, vector<2x256xf32>,
    } else {
    }
    %c0 = arith.constant 0 : index
    %c0_1 = arith.constant 0 : index
    %c0_2 = arith.constant 0 : index
    %3 = vector.load %arg3[%c0, %c0_1, %c0_2] : memref<1x4x256xf32, #tpu.memory_space<vmem>>, vector<1x4x256xf32>
    %4 = vector.shape_cast %3 : vector<1x4x256xf32> to vector<4x256xf32>
    %c0_3 = arith.constant 0 : index
    %c0_4 = arith.constant 0 : index
    %c0_5 = arith.constant 0 : index
    %5 = vector.load %arg4[%c0_3, %c0_4, %c0_5] : memref<1x320x256xbf16, #tpu.memory_space<vmem>>, vector<1x320x256xbf16>
    %6 = vector.shape_cast %5 : vector<1x320x256xbf16> to vector<320x256xbf16>
    %7 = vector.extract_strided_slice %4 {offsets = [0, 0], sizes = [2, 256], strides = [1, 1]} : vector<4x256xf32> to vector<2x256xf32>
    %8 = vector.extract_strided_slice %4 {offsets = [2, 0], sizes = [2, 256], strides = [1, 1]} : vector<4x256xf32> to vector<2x256xf32>
    %c0_6 = arith.constant 0 : index
    %c0_7 = arith.constant 0 : index
    %9 = vector.load %arg5[%c0_6, %c0_7] : memref<18x320xbf16, #tpu.memory_space<vmem>>, vector<18x320xbf16>
    %cst = arith.constant dense<0.000000e+00> : vector<18x256xf32>
    %10 = tpu.matmul %9, %6, %cst {dimension_numbers = #tpu.dot_dimension_numbers<[1], [0], [0], [1], [0, 0, 1, 1], [], []>} : vector<18x320xbf16>, vector<320x256xbf16>, vector<18x256xf32> -> vector<18x256xf32>
    %c0_8 = arith.constant 0 : index
    %c0_9 = arith.constant 0 : index
    %11 = vector.load %arg6[%c0_8, %c0_9] : memref<18x1xf32, #tpu.memory_space<vmem>>, vector<18x1xf32>
    %12 = vector.broadcast %11 : vector<18x1xf32> to vector<18x256xf32>
    %13 = arith.addf %10, %12 : vector<18x256xf32>
    %14 = arith.truncf %7 : vector<2x256xf32> to vector<2x256xbf16>
    %c0_10 = arith.constant 0 : index
    %c0_11 = arith.constant 0 : index
    %15 = vector.load %arg7[%c0_10, %c0_11] : memref<64x2xbf16, #tpu.memory_space<vmem>>, vector<64x2xbf16>
    %cst_12 = arith.constant dense<0.000000e+00> : vector<64x256xf32>
    %16 = tpu.matmul %15, %14, %cst_12 {dimension_numbers = #tpu.dot_dimension_numbers<[1], [0], [0], [1], [0, 0, 1, 1], [], []>} : vector<64x2xbf16>, vector<2x256xbf16>, vector<64x256xf32> -> vector<64x256xf32>
    %c0_13 = arith.constant 0 : index
    %c0_14 = arith.constant 0 : index
    %17 = vector.load %arg8[%c0_13, %c0_14] : memref<64x1xf32, #tpu.memory_space<vmem>>, vector<64x1xf32>
    %18 = vector.broadcast %17 : vector<64x1xf32> to vector<64x256xf32>
    %19 = arith.addf %16, %18 : vector<64x256xf32>
    %cst_15 = arith.constant 0.000000e+00 : f32
    %20 = vector.broadcast %cst_15 : f32 to vector<64x256xf32>
    %21 = arith.maximumf %19, %20 : vector<64x256xf32>
    %22 = arith.truncf %21 : vector<64x256xf32> to vector<64x256xbf16>
    %c0_16 = arith.constant 0 : index
    %c0_17 = arith.constant 0 : index
    %23 = vector.load %arg9[%c0_16, %c0_17] : memref<64x64xbf16, #tpu.memory_space<vmem>>, vector<64x64xbf16>
    %cst_18 = arith.constant dense<0.000000e+00> : vector<64x256xf32>
    %24 = tpu.matmul %23, %22, %cst_18 {dimension_numbers = #tpu.dot_dimension_numbers<[1], [0], [0], [1], [0, 0, 1, 1], [], []>} : vector<64x64xbf16>, vector<64x256xbf16>, vector<64x256xf32> -> vector<64x256xf32>
    %c0_19 = arith.constant 0 : index
    %c0_20 = arith.constant 0 : index
    %25 = vector.load %arg10[%c0_19, %c0_20] : memref<64x1xf32, #tpu.memory_space<vmem>>, vector<64x1xf32>
    %26 = vector.broadcast %25 : vector<64x1xf32> to vector<64x256xf32>
    %27 = arith.addf %24, %26 : vector<64x256xf32>
    %cst_21 = arith.constant 0.000000e+00 : f32
    %28 = vector.broadcast %cst_21 : f32 to vector<64x256xf32>
    %29 = arith.maximumf %27, %28 : vector<64x256xf32>
    %30 = arith.truncf %29 : vector<64x256xf32> to vector<64x256xbf16>
    %c0_22 = arith.constant 0 : index
    %c0_23 = arith.constant 0 : index
    %31 = vector.load %arg11[%c0_22, %c0_23] : memref<18x64xbf16, #tpu.memory_space<vmem>>, vector<18x64xbf16>
    %cst_24 = arith.constant dense<0.000000e+00> : vector<18x256xf32>
    %32 = tpu.matmul %31, %30, %cst_24 {dimension_numbers = #tpu.dot_dimension_numbers<[1], [0], [0], [1], [0, 0, 1, 1], [], []>} : vector<18x64xbf16>, vector<64x256xbf16>, vector<18x256xf32> -> vector<18x256xf32>
    %c0_25 = arith.constant 0 : index
    %c0_26 = arith.constant 0 : index
    %33 = vector.load %arg12[%c0_25, %c0_26] : memref<18x1xf32, #tpu.memory_space<vmem>>, vector<18x1xf32>
    %34 = vector.broadcast %33 : vector<18x1xf32> to vector<18x256xf32>
    %35 = arith.addf %32, %34 : vector<18x256xf32>
    %c0_27 = arith.constant 0 : index
    %c0_28 = arith.constant 0 : index
    %36 = vector.load %arg13[%c0_27, %c0_28] : memref<18x64xbf16, #tpu.memory_space<vmem>>, vector<18x64xbf16>
    %cst_29 = arith.constant dense<0.000000e+00> : vector<18x256xf32>
    %37 = tpu.matmul %36, %30, %cst_29 {dimension_numbers = #tpu.dot_dimension_numbers<[1], [0], [0], [1], [0, 0, 1, 1], [], []>} : vector<18x64xbf16>, vector<64x256xbf16>, vector<18x256xf32> -> vector<18x256xf32>
    %c0_30 = arith.constant 0 : index
    %c0_31 = arith.constant 0 : index
    %38 = vector.load %arg14[%c0_30, %c0_31] : memref<18x1xf32, #tpu.memory_space<vmem>>, vector<18x1xf32>
    %39 = vector.broadcast %38 : vector<18x1xf32> to vector<18x256xf32>
    %40 = arith.addf %37, %39 : vector<18x256xf32>
    %cst_32 = arith.constant 0.000000e+00 : f32
    %41 = vector.broadcast %cst_32 : f32 to vector<18x256xf32>
    %42 = arith.subf %41, %40 : vector<18x256xf32>
    %43 = math.exp %42 : vector<18x256xf32>
    %cst_33 = arith.constant 1.000000e+00 : f32
    %44 = vector.broadcast %cst_33 : f32 to vector<18x256xf32>
    %45 = arith.addf %44, %43 : vector<18x256xf32>
    %46 = tpu.reciprocal %45 {approx = true} : vector<18x256xf32> -> vector<18x256xf32>
    %cst_34 = arith.constant 9.99999974E-5 : f32
    %47 = vector.broadcast %cst_34 : f32 to vector<18x256xf32>
    %48 = arith.addf %46, %47 : vector<18x256xf32>
    %49 = arith.addf %13, %35 : vector<18x256xf32>
    %50 = arith.mulf %49, %48 : vector<18x256xf32>
    %51 = arith.truncf %50 : vector<18x256xf32> to vector<18x256xbf16>
    %c0_35 = arith.constant 0 : index
    %c0_36 = arith.constant 0 : index
    %52 = vector.load %arg15[%c0_35, %c0_36] : memref<64x18xbf16, #tpu.memory_space<vmem>>, vector<64x18xbf16>
    %cst_37 = arith.constant dense<0.000000e+00> : vector<64x256xf32>
    %53 = tpu.matmul %52, %51, %cst_37 {dimension_numbers = #tpu.dot_dimension_numbers<[1], [0], [0], [1], [0, 0, 1, 1], [], []>} : vector<64x18xbf16>, vector<18x256xbf16>, vector<64x256xf32> -> vector<64x256xf32>
    %c0_38 = arith.constant 0 : index
    %c0_39 = arith.constant 0 : index
    %54 = vector.load %arg16[%c0_38, %c0_39] : memref<64x1xf32, #tpu.memory_space<vmem>>, vector<64x1xf32>
    %55 = vector.broadcast %54 : vector<64x1xf32> to vector<64x256xf32>
    %56 = arith.addf %53, %55 : vector<64x256xf32>
    %cst_40 = arith.constant 0.000000e+00 : f32
    %57 = vector.broadcast %cst_40 : f32 to vector<64x256xf32>
    %58 = arith.maximumf %56, %57 : vector<64x256xf32>
    %59 = arith.truncf %58 : vector<64x256xf32> to vector<64x256xbf16>
    %c0_41 = arith.constant 0 : index
    %c0_42 = arith.constant 0 : index
    %60 = vector.load %arg17[%c0_41, %c0_42] : memref<64x64xbf16, #tpu.memory_space<vmem>>, vector<64x64xbf16>
    %cst_43 = arith.constant dense<0.000000e+00> : vector<64x256xf32>
    %61 = tpu.matmul %60, %59, %cst_43 {dimension_numbers = #tpu.dot_dimension_numbers<[1], [0], [0], [1], [0, 0, 1, 1], [], []>} : vector<64x64xbf16>, vector<64x256xbf16>, vector<64x256xf32> -> vector<64x256xf32>
    %c0_44 = arith.constant 0 : index
    %c0_45 = arith.constant 0 : index
    %62 = vector.load %arg18[%c0_44, %c0_45] : memref<64x1xf32, #tpu.memory_space<vmem>>, vector<64x1xf32>
    %63 = vector.broadcast %62 : vector<64x1xf32> to vector<64x256xf32>
    %64 = arith.addf %61, %63 : vector<64x256xf32>
    %cst_46 = arith.constant 0.000000e+00 : f32
    %65 = vector.broadcast %cst_46 : f32 to vector<64x256xf32>
    %66 = arith.maximumf %64, %65 : vector<64x256xf32>
    %67 = arith.truncf %66 : vector<64x256xf32> to vector<64x256xbf16>
    %c0_47 = arith.constant 0 : index
    %c0_48 = arith.constant 0 : index
    %68 = vector.load %arg19[%c0_47, %c0_48] : memref<2x64xbf16, #tpu.memory_space<vmem>>, vector<2x64xbf16>
    %cst_49 = arith.constant dense<0.000000e+00> : vector<2x256xf32>
    %69 = tpu.matmul %68, %67, %cst_49 {dimension_numbers = #tpu.dot_dimension_numbers<[1], [0], [0], [1], [0, 0, 1, 1], [], []>} : vector<2x64xbf16>, vector<64x256xbf16>, vector<2x256xf32> -> vector<2x256xf32>
    %c0_50 = arith.constant 0 : index
    %c0_51 = arith.constant 0 : index
    %70 = vector.load %arg20[%c0_50, %c0_51] : memref<2x1xf32, #tpu.memory_space<vmem>>, vector<2x1xf32>
    %71 = vector.broadcast %70 : vector<2x1xf32> to vector<2x256xf32>
    %72 = arith.addf %69, %71 : vector<2x256xf32>
    %c0_52 = arith.constant 0 : index
    %c0_53 = arith.constant 0 : index
    %73 = vector.load %arg21[%c0_52, %c0_53] : memref<2x64xbf16, #tpu.memory_space<vmem>>, vector<2x64xbf16>
    %cst_54 = arith.constant dense<0.000000e+00> : vector<2x256xf32>
    %74 = tpu.matmul %73, %67, %cst_54 {dimension_numbers = #tpu.dot_dimension_numbers<[1], [0], [0], [1], [0, 0, 1, 1], [], []>} : vector<2x64xbf16>, vector<64x256xbf16>, vector<2x256xf32> -> vector<2x256xf32>
    %c0_55 = arith.constant 0 : index
    %c0_56 = arith.constant 0 : index
    %75 = vector.load %arg22[%c0_55, %c0_56] : memref<2x1xf32, #tpu.memory_space<vmem>>, vector<2x1xf32>
    %76 = vector.broadcast %75 : vector<2x1xf32> to vector<2x256xf32>
    %77 = arith.addf %74, %76 : vector<2x256xf32>
    %cst_57 = arith.constant 0.000000e+00 : f32
    %78 = vector.broadcast %cst_57 : f32 to vector<2x256xf32>
    %79 = arith.subf %78, %77 : vector<2x256xf32>
    %80 = math.exp %79 : vector<2x256xf32>
    %cst_58 = arith.constant 1.000000e+00 : f32
    %81 = vector.broadcast %cst_58 : f32 to vector<2x256xf32>
    %82 = arith.addf %81, %80 : vector<2x256xf32>
    %cst_59 = arith.constant 1.000000e+00 : f32
    %83 = vector.broadcast %cst_59 : f32 to vector<2x256xf32>
    %84 = arith.divf %83, %82 : vector<2x256xf32>
    %cst_60 = arith.constant 9.99999974E-5 : f32
    %85 = vector.broadcast %cst_60 : f32 to vector<2x256xf32>
    %86 = arith.addf %84, %85 : vector<2x256xf32>
    %c0_61 = arith.constant 0 : index
    %c0_62 = arith.constant 0 : index
    %87 = vector.load %arg25[%c0_61, %c0_62] : memref<2x256xf32, #tpu.memory_space<vmem>>, vector<2x256xf32>
    %88 = math.log %86 : vector<2x256xf32>
    %89 = arith.addf %87, %88 : vector<2x256xf32>
    %c0_63 = arith.constant 0 : index
    %c0_64 = arith.constant 0 : index
    %90 = vector.load %arg25[%c0_63, %c0_64] : memref<2x256xf32, #tpu.memory_space<vmem>>, vector<2x256xf32>
    tpu.vector_store %arg25[%c0_63, %c0_64], %89 {strides = array<i32>} : memref<2x256xf32, #tpu.memory_space<vmem>>, vector<2x256xf32>,
    %91 = arith.addf %8, %72 : vector<2x256xf32>
    %92 = arith.mulf %91, %86 : vector<2x256xf32>
    %c0_65 = arith.constant 0 : index
    %c0_66 = arith.constant 0 : index
    %c0_67 = arith.constant 0 : index
    %93 = vector.load %arg23[%c0_65, %c0_66, %c0_67] : memref<1x4x256xf32, #tpu.memory_space<vmem>>, vector<1x2x256xf32>
    %94 = vector.shape_cast %93 : vector<1x2x256xf32> to vector<2x256xf32>
    %95 = vector.shape_cast %7 : vector<2x256xf32> to vector<1x2x256xf32>
    tpu.vector_store %arg23[%c0_65, %c0_66, %c0_67], %95 {strides = array<i32>} : memref<1x4x256xf32, #tpu.memory_space<vmem>>, vector<1x2x256xf32>,
    %c0_68 = arith.constant 0 : index
    %c2 = arith.constant 2 : index
    %c0_69 = arith.constant 0 : index
    %96 = vector.load %arg23[%c0_68, %c2, %c0_69] : memref<1x4x256xf32, #tpu.memory_space<vmem>>, vector<1x2x256xf32>
    %97 = vector.shape_cast %96 : vector<1x2x256xf32> to vector<2x256xf32>
    %98 = vector.shape_cast %92 : vector<2x256xf32> to vector<1x2x256xf32>
    tpu.vector_store %arg23[%c0_68, %c2, %c0_69], %98 {strides = array<i32>} : memref<1x4x256xf32, #tpu.memory_space<vmem>>, vector<1x2x256xf32>,
    %c0_i32_70 = arith.constant 0 : i32
    %99 = arith.cmpi eq, %arg2, %c0_i32_70 : i32
    %100 = arith.extui %99 : i1 to i32
    %c0_i32_71 = arith.constant 0 : i32
    %101 = arith.cmpi ne, %100, %c0_i32_71 : i32
    scf.if %101 {
      %c0_72 = arith.constant 0 : index
      %c0_73 = arith.constant 0 : index
      %102 = vector.load %arg25[%c0_72, %c0_73] : memref<2x256xf32, #tpu.memory_space<vmem>>, vector<2x256xf32>
      %103 = vector.shape_cast %102 : vector<2x256xf32> to vector<1x2x256xf32>
      %cst_74 = arith.constant dense<0.000000e+00> : vector<1xf32>
      %104 = vector.multi_reduction <add>, %103, %cst_74 [1, 2] : vector<1x2x256xf32> to vector<1xf32>
      %105 = vector.shape_cast %104 : vector<1xf32> to vector<1x1x1xf32>
      %106 = vector.extract %105[0, 0, 0] : f32 from vector<1x1x1xf32>
      %cst_75 = arith.constant 1.000000e+00 : f32
      %107 = arith.mulf %cst_75, %106 : f32
      %108 = vector.broadcast %107 : f32 to vector<1x1x8x128xf32>
      %c0_76 = arith.constant 0 : index
      %c0_77 = arith.constant 0 : index
      %c0_78 = arith.constant 0 : index
      %c0_79 = arith.constant 0 : index
      %109 = vector.load %arg24[%c0_76, %c0_77, %c0_78, %c0_79] : memref<1x1x8x128xf32, #tpu.memory_space<vmem>>, vector<1x1x8x128xf32>
      tpu.vector_store %arg24[%c0_76, %c0_77, %c0_78, %c0_79], %108 {strides = array<i32>} : memref<1x1x8x128xf32, #tpu.memory_space<vmem>>, vector<1x1x8x128xf32>,
    } else {
    }
    return
  }
  func.func @transform_0(%arg0: i32, %arg1: i32, %arg2: i32) -> (i32, i32, i32) {
    %c1_i32 = arith.constant 1 : i32
    %0 = arith.muli %arg1, %c1_i32 : i32
    %1 = arith.addi %0, %arg2 : i32
    %c0_i32 = arith.constant 0 : i32
    %c0_i32_0 = arith.constant 0 : i32
    return %arg0, %c0_i32, %1 : i32, i32, i32
  }
  func.func @transform_1(%arg0: i32, %arg1: i32, %arg2: i32) -> (i32, i32, i32) {
    %c1_i32 = arith.constant 1 : i32
    %0 = arith.muli %arg1, %c1_i32 : i32
    %1 = arith.addi %0, %arg2 : i32
    %c0_i32 = arith.constant 0 : i32
    %c0_i32_0 = arith.constant 0 : i32
    return %arg0, %c0_i32, %1 : i32, i32, i32
  }
  func.func @transform_2(%arg0: i32, %arg1: i32, %arg2: i32) -> (i32, i32) {
    %c0_i32 = arith.constant 0 : i32
    %c0_i32_0 = arith.constant 0 : i32
    %c0_i32_1 = arith.constant 0 : i32
    return %c0_i32, %c0_i32_0 : i32, i32
  }
  func.func @transform_3(%arg0: i32, %arg1: i32, %arg2: i32) -> (i32, i32) {
    %c0_i32 = arith.constant 0 : i32
    %c0_i32_0 = arith.constant 0 : i32
    %c0_i32_1 = arith.constant 0 : i32
    return %c0_i32, %c0_i32_0 : i32, i32
  }
  func.func @transform_4(%arg0: i32, %arg1: i32, %arg2: i32) -> (i32, i32) {
    %c0_i32 = arith.constant 0 : i32
    %c0_i32_0 = arith.constant 0 : i32
    %c0_i32_1 = arith.constant 0 : i32
    return %c0_i32, %c0_i32_0 : i32, i32
  }
  func.func @transform_5(%arg0: i32, %arg1: i32, %arg2: i32) -> (i32, i32) {
    %c0_i32 = arith.constant 0 : i32
    %c0_i32_0 = arith.constant 0 : i32
    %c0_i32_1 = arith.constant 0 : i32
    return %c0_i32, %c0_i32_0 : i32, i32
  }
  func.func @transform_6(%arg0: i32, %arg1: i32, %arg2: i32) -> (i32, i32) {
    %c0_i32 = arith.constant 0 : i32
    %c0_i32_0 = arith.constant 0 : i32
    %c0_i32_1 = arith.constant 0 : i32
    return %c0_i32, %c0_i32_0 : i32, i32
  }
  func.func @transform_7(%arg0: i32, %arg1: i32, %arg2: i32) -> (i32, i32) {
    %c0_i32 = arith.constant 0 : i32
    %c0_i32_0 = arith.constant 0 : i32
    %c0_i32_1 = arith.constant 0 : i32
    return %c0_i32, %c0_i32_0 : i32, i32
  }
  func.func @transform_8(%arg0: i32, %arg1: i32, %arg2: i32) -> (i32, i32) {
    %c0_i32 = arith.constant 0 : i32
    %c0_i32_0 = arith.constant 0 : i32
    %c0_i32_1 = arith.constant 0 : i32
    return %c0_i32, %c0_i32_0 : i32, i32
  }
  func.func @transform_9(%arg0: i32, %arg1: i32, %arg2: i32) -> (i32, i32) {
    %c0_i32 = arith.constant 0 : i32
    %c0_i32_0 = arith.constant 0 : i32
    %c0_i32_1 = arith.constant 0 : i32
    return %c0_i32, %c0_i32_0 : i32, i32
  }
  func.func @transform_10(%arg0: i32, %arg1: i32, %arg2: i32) -> (i32, i32) {
    %c0_i32 = arith.constant 0 : i32
    %c0_i32_0 = arith.constant 0 : i32
    %c0_i32_1 = arith.constant 0 : i32
    return %c0_i32, %c0_i32_0 : i32, i32
  }
  func.func @transform_11(%arg0: i32, %arg1: i32, %arg2: i32) -> (i32, i32) {
    %c0_i32 = arith.constant 0 : i32
    %c0_i32_0 = arith.constant 0 : i32
    %c0_i32_1 = arith.constant 0 : i32
    return %c0_i32, %c0_i32_0 : i32, i32
  }
  func.func @transform_12(%arg0: i32, %arg1: i32, %arg2: i32) -> (i32, i32) {
    %c0_i32 = arith.constant 0 : i32
    %c0_i32_0 = arith.constant 0 : i32
    %c0_i32_1 = arith.constant 0 : i32
    return %c0_i32, %c0_i32_0 : i32, i32
  }
  func.func @transform_13(%arg0: i32, %arg1: i32, %arg2: i32) -> (i32, i32) {
    %c0_i32 = arith.constant 0 : i32
    %c0_i32_0 = arith.constant 0 : i32
    %c0_i32_1 = arith.constant 0 : i32
    return %c0_i32, %c0_i32_0 : i32, i32
  }
  func.func @transform_14(%arg0: i32, %arg1: i32, %arg2: i32) -> (i32, i32) {
    %c0_i32 = arith.constant 0 : i32
    %c0_i32_0 = arith.constant 0 : i32
    %c0_i32_1 = arith.constant 0 : i32
    return %c0_i32, %c0_i32_0 : i32, i32
  }
  func.func @transform_15(%arg0: i32, %arg1: i32, %arg2: i32) -> (i32, i32) {
    %c0_i32 = arith.constant 0 : i32
    %c0_i32_0 = arith.constant 0 : i32
    %c0_i32_1 = arith.constant 0 : i32
    return %c0_i32, %c0_i32_0 : i32, i32
  }
  func.func @transform_16(%arg0: i32, %arg1: i32, %arg2: i32) -> (i32, i32) {
    %c0_i32 = arith.constant 0 : i32
    %c0_i32_0 = arith.constant 0 : i32
    %c0_i32_1 = arith.constant 0 : i32
    return %c0_i32, %c0_i32_0 : i32, i32
  }
  func.func @transform_17(%arg0: i32, %arg1: i32, %arg2: i32) -> (i32, i32) {
    %c0_i32 = arith.constant 0 : i32
    %c0_i32_0 = arith.constant 0 : i32
    %c0_i32_1 = arith.constant 0 : i32
    return %c0_i32, %c0_i32_0 : i32, i32
  }
  func.func @transform_18(%arg0: i32, %arg1: i32, %arg2: i32) -> (i32, i32) {
    %c0_i32 = arith.constant 0 : i32
    %c0_i32_0 = arith.constant 0 : i32
    %c0_i32_1 = arith.constant 0 : i32
    return %c0_i32, %c0_i32_0 : i32, i32
  }
  func.func @transform_19(%arg0: i32, %arg1: i32, %arg2: i32) -> (i32, i32) {
    %c0_i32 = arith.constant 0 : i32
    %c0_i32_0 = arith.constant 0 : i32
    %c0_i32_1 = arith.constant 0 : i32
    return %c0_i32, %c0_i32_0 : i32, i32
  }
  func.func @transform_20(%arg0: i32, %arg1: i32, %arg2: i32) -> (i32, i32, i32) {
    %c1_i32 = arith.constant 1 : i32
    %0 = arith.muli %arg1, %c1_i32 : i32
    %1 = arith.addi %0, %arg2 : i32
    %c0_i32 = arith.constant 0 : i32
    %c0_i32_0 = arith.constant 0 : i32
    return %arg0, %c0_i32, %1 : i32, i32, i32
  }
  func.func @transform_21(%arg0: i32, %arg1: i32, %arg2: i32) -> (i32, i32, i32, i32) {
    %c0_i32 = arith.constant 0 : i32
    %c0_i32_0 = arith.constant 0 : i32
    %c0_i32_1 = arith.constant 0 : i32
    return %arg0, %arg1, %c0_i32, %c0_i32_0 : i32, i32, i32, i32
  }
}

</mosaic_0001>

<bundles_post_ra>
// kernel: tpu_custom_call.1
= control target key start
LH: loop header
LB: loop body
LE: loop exit
PB: predicated region body
PF: predicated region fallthrough
CT: control target
= control target key end

     0   :  { %s3678_s0 = inlined_call_operand.vmem [shape: f32[2,4,256], index: 0, kind: input, shape index: {}]   ;;  %s3679_s1 = inlined_call_operand.hbm [shape: bf16[2,320,256], index: 1, kind: input, shape index: {}]   ;;  %s3680_s2 = inlined_call_operand.vmem [shape: bf16[18,320], index: 2, kind: input, shape index: {}]   ;;  %s3681_s3 = inlined_call_operand.vmem [shape: f32[18,1], index: 3, kind: input, shape index: {}]   ;;  %s3682_s4 = inlined_call_operand.vmem [shape: bf16[64,2], index: 4, kind: input, shape index: {}]   ;;  %s3683_s5 = inlined_call_operand.vmem [shape: f32[64,1], index: 5, kind: input, shape index: {}]   ;;  %s3684_s6 = inlined_call_operand.vmem [shape: bf16[64,64], index: 6, kind: input, shape index: {}]   ;;  %s3685_s7 = inlined_call_operand.vmem [shape: f32[64,1], index: 7, kind: input, shape index: {}]   ;;  %s3686_s8 = inlined_call_operand.vmem [shape: bf16[18,64], index: 8, kind: input, shape index: {}]   ;;  %s3687_s9 = inlined_call_operand.vmem [shape: f32[18,1], index: 9, kind: input, shape index: {}]   ;;  %s3688_s10 = inlined_call_operand.vmem [shape: bf16[18,64], index: 10, kind: input, shape index: {}]   ;;  %s3689_s11 = inlined_call_operand.vmem [shape: f32[18,1], index: 11, kind: input, shape index: {}]   ;;  %s3690_s12 = inlined_call_operand.vmem [shape: bf16[64,18], index: 12, kind: input, shape index: {}]   ;;  %s3691_s13 = inlined_call_operand.vmem [shape: f32[64,1], index: 13, kind: input, shape index: {}]   ;;  %s3692_s14 = inlined_call_operand.vmem [shape: bf16[64,64], index: 14, kind: input, shape index: {}]   ;;  %s3693_s15 = inlined_call_operand.vmem [shape: f32[64,1], index: 15, kind: input, shape index: {}]   ;;  %s3694_s16 = inlined_call_operand.vmem [shape: bf16[2,64], index: 16, kind: input, shape index: {}]   ;;  %s3695_s17 = inlined_call_operand.vmem [shape: f32[2,1], index: 17, kind: input, shape index: {}]   ;;  %s3696_s18 = inlined_call_operand.vmem [shape: bf16[2,64], index: 18, kind: input, shape index: {}]   ;;  %s3697_s19 = inlined_call_operand.vmem [shape: f32[2,1], index: 19, kind: input, shape index: {}]   ;;  %s3698_s20 = inlined_call_operand.hbm [shape: f32[2,4,256], index: 20, kind: output, shape index: {0}]   ;;  %s3699_s21 = inlined_call_operand.hbm [shape: f32[2,1,8,128], index: 21, kind: output, shape index: {1}]  }
   0x1   :  { %3715 = sst [smem:[#allocation19_spill]] %s3678_s0 }
   0x2   :  { %3716 = sst [smem:[#allocation20_spill]] %s3679_s1 }
   0x3   :  { %3717 = sst [smem:[#allocation21_spill]] %s3680_s2 }
   0x4   :  { %3718 = sst [smem:[#allocation22_spill]] %s3681_s3 }
   0x5   :  { %3719 = sst [smem:[#allocation23_spill]] %s3682_s4 }
   0x6   :  { %3720 = sst [smem:[#allocation24_spill]] %s3683_s5 }
   0x7   :  { %3721 = sst [smem:[#allocation25_spill]] %s3684_s6 }
   0x8   :  { %3722 = sst [smem:[#allocation26_spill]] %s3685_s7 }
   0x9   :  { %3723 = sst [smem:[#allocation27_spill]] %s3686_s8 }
   0xa   :  { %3724 = sst [smem:[#allocation28_spill]] %s3687_s9 }
   0xb   :  { %3725 = sst [smem:[#allocation29_spill]] %s3688_s10 }
   0xc   :  { %3726 = sst [smem:[#allocation30_spill]] %s3694_s16 }
   0xd   :  { %3727 = sst [smem:[#allocation31_spill]] %s3696_s18 }
   0xe   :  { %3728 = sst [smem:[#allocation32_spill]] %s3698_s20 }
   0xf   :  { %3729 = sst [smem:[#allocation33_spill]] %s3699_s21 }
  0x10   :  { %27 = vsyncpa [#allocation4], 0 }
  0x11   :  { %29 = vsyncpa [#allocation4 + $0x1], 0 }
  0x12   :  { %30 = vsyncpa [#allocation5], 0 }
  0x13   :  { %32 = vsyncpa [#allocation5 + $0x1], 0 }
  0x14   :  { %33 = vsyncpa [#allocation8], 0 }
  0x15   :  { %35 = vsyncpa [#allocation8 + $0x1], 0  ;;  %s3082_s2 = smov 0   ;;  %s3084_s25 = smov 0  }
  0x16   :  { %s3086_s26 = smov 0   ;;  %s3088_s27 = smov 0  }
  0x17   :  { %s3090_s3 = smov 0   ;;  %s3092_s28 = smov 0  }
  0x18 LB: > { %3730 = sst [smem:[#allocation12_spill]] %s2942_s2  ;;  %s2509_s29 = sadd.s32 4294967295, %s2962_s28   ;;  %s2962_s28 = sphi %s3092_s28, %s41_s28   ;;  %s2958_s3 = sphi %s3090_s3, %s3768_s3   ;;  %s2954_s27 = sphi %s3088_s27, %s3767_s27   ;;  %s2950_s26 = sphi %s3086_s26, %s3766_s26   ;;  %s2946_s25 = sphi %s3084_s25, %s3770_s25   ;;  %s2942_s2 = sphi %s3082_s2, %s3769_s2  }
  0x19   : > { %3731 = sst [smem:[#allocation13_spill]] %s2950_s26  ;;  %s2510_s0 = sadd.s32 4294967294, %s2962_s28  }
  0x1a   : > { %3732 = sst [smem:[#allocation14_spill]] %s2958_s3  ;;  %s60_s4 = sadd.s32 1, %s2958_s3 }
  0x1b   : > { %s101_s30 = sadd.s32 1, %s2950_s26  ;;  %p62_p0 = scmp.ge.s32.totalorder %s60_s4, 2 }
  0x1c   : > { %p108_p1 = scmp.ne.s32.totalorder %s2950_s26, %s2946_s25  ;;  %p109_p2 = scmp.eq.s32.totalorder %s2962_s28, 0 }
  0x1d   : > { %p114_p3 = scmp.ne.s32.totalorder %s2946_s25, %s2942_s2  ;;  %s3772_s4 = smov (%p62_p0, %s60_s4), 0 }
  0x1e   : > { %3733 = sst [smem:[#allocation15_spill]] %s3772_s4  ;;  %p3123_p4 = por %p109_p2, %p108_p1 }
  0x1f   : > { %p115_p5 = scmp.eq.s32.totalorder %s2509_s29, 0  ;;  %s96_s22 = ssub.s32 %s2958_s3, %s3772_s4 }
  0x20   : > { %p520_p6 = scmp.eq.s32.totalorder %s2509_s29, 1  ;;  %p99_p7 = scmp.eq.s32.totalorder %s96_s22, 0 }
  0x21   : > { %p3129_p8 = por %p115_p5, %p114_p3  ;;  %p526_p10 = scmp.eq.s32.totalorder %s2510_s0, 1 }
  0x22   : > { %p3133_p9 = por %p520_p6, %p108_p1  ;;  %p2643_p13 = scmp.lt.s32.totalorder %s2962_s28, 2 }
  0x23   : > { %s3138_s24 = scalar_select %p99_p7, %s2950_s26, %s101_s30  }
  0x24   : > { %s3736_s1 = scalar_select %p3133_p9, 1, 0 }
  0x25   : > { %3738 = sst [smem:[#allocation17_spill]] %s3138_s24  ;;  %p3140_p11 = por %p526_p10, %p114_p3 }
  0x26   : > { %3737 = sst [smem:[#allocation16_spill]] %s3736_s1  ;;  %s643_s29 = sand.u32 1, %s2950_s26  }
  0x27   : > { %s3739_s2 = scalar_select %p3140_p11, 1, 0 }
  0x28   : > { %s2621_s22 = smul.u32 320, %s643_s29  ;;  %p3150_p0 = pnand %p2643_p13, %p3123_p4 }
  0x29   : > { %3740 = sst [smem:[#allocation18_spill]] %s3739_s2  ;;  %s2622_s4 = smul.u32 5120, %s2958_s3 }
  0x2a   : > { %s3742_s1 = sld [smem:[#allocation20_spill]]  ;;  %s647_s30 = scalar_lea.vmem [#allocation3], %s2621_s22 }
  0x2b   : > { %s657_s24 = sshll.u32 %s647_s30, 4  ;;  %p2514_p1 = scmp.ge.s32.totalorder %s2962_s28, 1  ;;  %s658_s24 = int_to_ptr.vmem [resolvable:$true] %s657_s24 }
  0x2c   : > { %s644_s2 = scalar_lea.sflag [#allocation4], %s643_s29  ;;  %p2826_p2 = pneg %p3150_p0 }
  0x2d   : > { %s2837_s26 = scalar_lea.vmem %s658_s24, 5120  ;;  %s2964_s5 = smov [#allocation3]  }
  0x2e   : > { %p2838_p3 = scmp.ne.s32.totalorder %s658_s24, %s2837_s26  ;;  %s2842_s3 = sshll.u32 %s2964_s5, 4  ;;  %s2843_s3 = int_to_ptr.vmem [resolvable:$false] %s2842_s3 }
  0x2f   : > { %s2844_s16 = scalar_lea.vmem %s2843_s3, 10240  ;;  %p2845_p4 = scmp.lt.s32.totalorder %s658_s24, %s2843_s3 }
  0x30   : > { %s656_s0 = scalar_lea.hbm %s3742_s1, %s2622_s4  ;;  %p2840_p5 = pnand %p2838_p3, %p2826_p2 }
  0x31   : > { %p2846_p7 = scmp.lt.s32.totalorder %s2844_s16, %s2837_s26 }
  0x32   : > { %p2841_p6 = pneg %p2840_p5 }
  0x33   : > { %p2847_p10 = por %p2846_p7, %p2845_p4 }
  0x35   : > { %p2848_p13 = pnand %p2847_p10, %p2841_p6 }
  0x37   : > { %2851 = shalt.err (!%p2848_p13)
}
  0x38   : > { %s2965_s18 = smov 128   ;;  %s2966_s20 = smov 8  }
  0x39   : > { %2635 = dma.hbm_to_vmem [thread:$0]  (!%p3150_p0), %s656_s0, 5120, %s658_s24, %s644_s2, %s2965_s18, %s2965_s18, %s2966_s20  }
  0x3a   : > { %p665_p12 = scmp.lt.s32.totalorder %s2962_s28, 3 }
  0x3c   : > { %p666_p2 = pnand %p2514_p1, %p665_p12 }
  0x3d   : > { %s3166_s4 = sand.u32 (!%p666_p2), 1, %s2946_s25  }
  0x3e   : > { %669 = sbr.rel (%p666_p2) target bundleno = 1834 (0x72a), region = 100  ;;  %s672_s26 = scalar_lea.sflag (!%p666_p2), [#allocation4], %s3166_s4 }
  0x3f   : > { %s2623_s16 = smul.u32 (!%p666_p2), 320, %s3166_s4 }
  0x41   : > { %s3170_s3 = scalar_lea.vmem (!%p666_p2), [#allocation3], %s2623_s16 }
  0x43   : > { %2929 = dma.done.wait (%p3129_p8), %s672_s26, 5120  }
  0x44   : > { %2931 = vsyncadd (%p3129_p8), %s672_s26, 4294962176  ;;  %v2967_v0 = vmov 0   ;;  %v2700_v1 = vld [vmem:[%s3170_s3 + $0x74] ss:$8 sps:$4 sm:$0xff]   ;;  %v2704_v3 = vld [vmem:[%s3170_s3 + $0x70] ss:$8 sps:$4 sm:$0xff]  }
  0x45   : > { %1151 = vmatprep.mubr.bf16.mxu1 %v2967_v0  ;;  %2699 = vset.pattern.permute.xlu1 %v2967_v0  ;;  %v2702_v2 = vld [vmem:[%s3170_s3 + $0x134] ss:$8 sps:$4 sm:$0xff]   ;;  %v2705_v4 = vld [vmem:[%s3170_s3 + $0x130] ss:$8 sps:$4 sm:$0xff]   ;;  %p751_p8 = scmp.lt.s32.totalorder %s2954_s27, 1  ;;  %s3743_s24 = sld [smem:[#allocation19_spill]] }
  0x46   : > { %2698 = vset.pattern.permute.xlu0 %v2967_v0  ;;  %1068 = vmatprep.subr.bf16.mxu0 %v2700_v1  ;;  %v2706_v5 = vld [vmem:[%s3170_s3 + $0x64] ss:$8 sps:$4 sm:$0xff]   ;;  %v2710_v7 = vld [vmem:[%s3170_s3 + $0x60] ss:$8 sps:$4 sm:$0xff]   ;;  %v2712_v9 = vld [vmem:[%s3170_s3 + $0x54] ss:$8 sps:$4 sm:$0xff]  }
  0x47   : > { %1127 = vmatprep.subr.bf16.mxu1 %v2702_v2  ;;  %1069 = vmatpush1.bf16.msra.mxu0 %v2704_v3  ;;  %v2708_v6 = vld [vmem:[%s3170_s3 + $0x124] ss:$8 sps:$4 sm:$0xff]   ;;  %v2711_v8 = vld [vmem:[%s3170_s3 + $0x120] ss:$8 sps:$4 sm:$0xff]   ;;  %s752_s21 = scalar_select %p751_p8, %s2954_s27, 1  ;;  %vm1061_vm0 = vcmask 523264  }
  0x48   : > { %1128 = vmatpush1.bf16.msra.mxu1 %v2705_v4  ;;  %1070 = vmatprep.subr.bf16.mxu0 %v2706_v5  ;;  %v2714_v10 = vld [vmem:[%s3170_s3 + $0x114] ss:$8 sps:$4 sm:$0xff]   ;;  %v2716_v11 = vld [vmem:[%s3170_s3 + $0x50] ss:$8 sps:$4 sm:$0xff]   ;;  %v2718_v13 = vld [vmem:[%s3170_s3 + $0x44] ss:$8 sps:$4 sm:$0xff]  }
  0x49   : > { %1129 = vmatprep.subr.bf16.mxu1 %v2708_v6  ;;  %v2717_v12 = vld [vmem:[%s3170_s3 + $0x110] ss:$8 sps:$4 sm:$0xff]   ;;  %v2720_v14 = vld [vmem:[%s3170_s3 + $0x104] ss:$8 sps:$4 sm:$0xff]   ;;  %s2619_s2 = sshll.u32 %s752_s21, 3  ;;  %s3744_s30 = sld [smem:[#allocation21_spill]] }
  0x4a   : > { %v2722_v15 = vld [vmem:[%s3170_s3 + $0x40] ss:$8 sps:$4 sm:$0xff]   ;;  %v2724_v17 = vld [vmem:[%s3170_s3 + $0x34] ss:$8 sps:$4 sm:$0xff]   ;;  %v2727_v19 = vld [vmem:[%s3170_s3 + $0x30] ss:$8 sps:$4 sm:$0xff]  }
  0x4b   : > { %1071 = vmatpush1.bf16.msra.mxu0 %v2710_v7  ;;  %v2723_v16 = vld [vmem:[%s3170_s3 + $0x100] ss:$8 sps:$4 sm:$0xff]   ;;  %s758_s29 = scalar_lea.vmem %s3743_s24, %s2619_s2  ;;  %v2728_v20 = vld [vmem:[%s3170_s3 + $0x24] ss:$8 sps:$4 sm:$0xff]   ;;  %vm1264_vm1 = vcmask 1040384   ;;  %s3745_s26 = sld [smem:[#allocation24_spill]] }
  0x4c   : > { %1130 = vmatpush1.bf16.msra.mxu1 %v2711_v8  ;;  %1072 = vmatprep.subr.bf16.mxu0 %v2712_v9  ;;  %v3206_v21 = vld [vmem:[%s758_s29] sm:$0xff]  ;;  %v2734_v29 = vld [vmem:[%s3170_s3 + $0x10] ss:$8 sps:$4 sm:$0xff]   ;;  %v2735_v30 = vld [vmem:[%s3170_s3 + $0x4] ss:$8 sps:$4 sm:$0xff]   ;;  %s3747_s18 = sld [smem:[#allocation23_spill]] }
  0x4d   : > { %1131 = vmatprep.subr.bf16.mxu1 %v2714_v10  ;;  %v1171_v22 = vcombine.high %v3206_v21, %v3206_v21  ;;  %v1173_v23 = vpack.c.bf16 %v3206_v21, %v3206_v21  ;;  %v2730_v24 = vld [vmem:[%s3170_s3 + $0x20] ss:$8 sps:$4 sm:$0xff]   ;;  %v2731_v27 = vld [vmem:[%s3170_s3 + $0x14] ss:$8 sps:$4 sm:$0xff]   ;;  %vm1251_vm2 = vcmask 15360   ;;  %s3748_s7 = sld [smem:[#allocation26_spill]] }
  0x4e   : > { %v2738_v33 = vld [vmem:[%s3170_s3] ss:$8 sps:$4 sm:$0xff]   ;;  %v2739_v36 = vld [vmem:[%s3170_s3 + $0xf4] ss:$8 sps:$4 sm:$0xff]   ;;  %v2742_v40 = vld [vmem:[%s3170_s3 + $0xf0] ss:$8 sps:$4 sm:$0xff]  }
  0x4f   : > { %1073 = vmatpush1.bf16.msra.mxu0 %v2716_v11  ;;  %v2726_v18 = vld [vmem:[%s3744_s30 + $0x8] ss:$12 sps:$4 sm:$0xff]   ;;  %v1174_v25 = vpack.c.bf16 %v1171_v22, %v1171_v22  ;;  %v1266_v26 = vsel %vm1264_vm1, %v1173_v23, 0  ;;  %v2733_v28 = vld [vmem:[%s3744_s30 + $0x20] ss:$0 sps:$4 sm:$0x11]  }
  0x50   : > { %1132 = vmatpush1.bf16.msra.mxu1 %v2717_v12  ;;  %1074 = vmatprep.subr.bf16.mxu0 %v2718_v13  ;;  %v2743_v41 = vld [vmem:[%s3170_s3 + $0xe4] ss:$8 sps:$4 sm:$0xff]   ;;  %v2745_v44 = vld [vmem:[%s3170_s3 + $0xe0] ss:$8 sps:$4 sm:$0xff]   ;;  %v2746_v45 = vld [vmem:[%s3170_s3 + $0xd4] ss:$8 sps:$4 sm:$0xff]  }
  0x51   : > { %1133 = vmatprep.subr.bf16.mxu1 %v2720_v14  ;;  %s3746_s21 = smov %s3745_s26  ;;  %v1189_v31 = vld [vmem:[%s3745_s26 + $0x30] sm:$0xff]  ;;  %v2752_v54 = vld [vmem:[%s3170_s3 + $0xc0] ss:$8 sps:$4 sm:$0xff]   ;;  %v2753_v55 = vld [vmem:[%s3170_s3 + $0xb4] ss:$8 sps:$4 sm:$0xff]   ;;  %s3749_s29 = sld [smem:[#allocation22_spill]] }
  0x52   : > { %v1187_v32 = vld [vmem:[%s3746_s21 + $0x20] sm:$0xff]  ;;  %1223 = vperm.xlu0 %2698, %v1189_v31   ;;  %v1190_v34 = vld [vmem:[%s3746_s21 + $0x38] sm:$0xff]  ;;  %v1188_v35 = vld [vmem:[%s3746_s21 + $0x28] sm:$0xff]  ;;  %s3750_s9 = sld [smem:[#allocation28_spill]]  ;;  %vm1853_vm3 = vcmask 146432   ;;  %s3713_s22 = sshll.u32 %s3166_s4, 3 }
  0x53   : > { %1075 = vmatpush1.bf16.msra.mxu0 %v2722_v15  ;;  %1213 = vperm.xlu1 %2699, %v1187_v32   ;;  %v2741_v37 = vld [vmem:[%s3747_s18] sm:$0xff]   ;;  %v1186_v38 = vld [vmem:[%s3746_s21 + $0x18] sm:$0xff]  ;;  %v1185_v39 = vld [vmem:[%s3746_s21 + $0x10] sm:$0xff]  ;;  %s3751_s6 = sld [smem:[#allocation25_spill]]  ;;  %s3603_s0 = scalar_lea.vmem [#allocation6], %s3713_s22  ;;  %vm2317_vm4 = vcmask 1041408  }
  0x54   : > { %1134 = vmatpush1.bf16.msra.mxu1 %v2723_v16  ;;  %1076 = vmatprep.subr.bf16.mxu0 %v2724_v17  ;;  %v1184_v42 = vld [vmem:[%s3746_s21 + $0x8] sm:$0xff]  ;;  %v1183_v43 = vld [vmem:[%s3746_s21] sm:$0xff]  ;;  %v1383_v48 = vld [vmem:[%s3748_s7 + $0x38] sm:$0xff]  ;;  %s3752_s8 = sld [smem:[#allocation27_spill]]  ;;  %2300 = vst [vmem:[%s3603_s0] sm:$0x33] %v3206_v21  ;;  %s2355_s20 = sshll.u32 %s3603_s0, 4  ;;  %s2356_s20 = int_to_ptr.vmem [resolvable:$true] %s2355_s20 }
  0x55   : > { %2571 = vmatprep.subr.msk.bf16.mxu1 %vm1264_vm1, %v1174_v25  ;;  %v2769_v46 = vld [vmem:[%s3744_s30 + $0x4] ss:$12 sps:$4 sm:$0xff]   ;;  %v2748_v47 = vld [vmem:[%s3747_s18 + $0x8] sm:$0xff]   ;;  %v2749_v50 = vld [vmem:[%s3170_s3 + $0xd0] ss:$8 sps:$4 sm:$0xff]   ;;  %s3753_s10 = sld [smem:[#allocation29_spill]] }
  0x56   : > { %1228 = vperm.xlu0 %2698, %v1190_v34   ;;  %v1382_v49 = vld [vmem:[%s3748_s7 + $0x30] sm:$0xff]  ;;  %1100 = vmatprep.mubr.bf16.mxu0 %v2769_v46  ;;  %v1381_v52 = vld [vmem:[%s3748_s7 + $0x28] sm:$0xff]  ;;  %v1380_v53 = vld [vmem:[%s3748_s7 + $0x20] sm:$0xff]  ;;  %s3754_s23 = sld [smem:[#allocation30_spill]]  ;;  %s3714_s16 = sshll.u32 %s2954_s27, 7 }
  0x57   : > { %2565 = vmatmul.mubr.msk.bf16.vlgmr.msra.gmra.mxu1 %vm1061_vm0, %v2726_v18  ;;  %1077 = vmatpush1.bf16.msra.mxu0 %v2727_v19  ;;  %v2750_v51 = vld [vmem:[%s3170_s3 + $0xc4] ss:$8 sps:$4 sm:$0xff]   ;;  %v1379_v57 = vld [vmem:[%s3748_s7 + $0x18] sm:$0xff]  ;;  %v1376_v62 = vld [vmem:[%s3748_s7] sm:$0xff]  ;;  %s3755_s24 = sld [smem:[#allocation31_spill]]  ;;  %s2333_s1 = scalar_lea.sflag [#allocation5], %s3166_s4 }
  0x58   : > { %1161 = vmatprep.mubr.bf16.mxu1 %v2967_v0  ;;  %1078 = vmatprep.subr.bf16.mxu0 %v2728_v20  ;;  %v2755_v56 = vld [vmem:[%s3747_s18 + $0x10] sm:$0xff]   ;;  %v1377_v61 = vld [vmem:[%s3748_s7 + $0x8] sm:$0xff]  ;;  %v2760_v1 = vld [vmem:[%s3170_s3 + $0x94] ss:$8 sps:$4 sm:$0xff]   ;;  %s2970_s22 = smov [#allocation6]  }
  0x59   : > { %1286 = vmatpush1.bf16.msra.mxu1 %v1266_v26  ;;  %1218 = vperm.xlu1 %2699, %v1188_v35   ;;  %v1378_v58 = vld [vmem:[%s3748_s7 + $0x10] sm:$0xff]  ;;  %v2759_v63 = vld [vmem:[%s3170_s3 + $0xa0] ss:$8 sps:$4 sm:$0xff]   ;;  %v2762_v2 = vld [vmem:[%s3747_s18 + $0x18] sm:$0xff]  }
  0x5a   : > { %1203 = vperm.xlu0 %2698, %v1185_v39   ;;  %v2756_v59 = vld [vmem:[%s3170_s3 + $0xb0] ss:$8 sps:$4 sm:$0xff]   ;;  %v2757_v60 = vld [vmem:[%s3170_s3 + $0xa4] ss:$8 sps:$4 sm:$0xff]   ;;  %v1642_v3 = vld [vmem:[%s3689_s11] sm:$0xff] }
  0x5b   : > { %1079 = vmatpush1.bf16.msra.mxu0 %v2730_v24  ;;  %v1644_v4 = vld [vmem:[%s3689_s11 + $0x10] sm:$0x3]  ;;  %v2763_v5 = vld [vmem:[%s3170_s3 + $0x90] ss:$8 sps:$4 sm:$0xff]   ;;  %v1643_v7 = vld [vmem:[%s3689_s11 + $0x8] sm:$0xff] }
  0x5c   : > { %1080 = vmatprep.subr.bf16.mxu0 %v2731_v27  ;;  %v2764_v6 = vld [vmem:[%s3170_s3 + $0x84] ss:$8 sps:$4 sm:$0xff]   ;;  %v2766_v9 = vld [vmem:[%s3170_s3 + $0x80] ss:$8 sps:$4 sm:$0xff]   ;;  %v816_v10 = vld [vmem:[%s3744_s30 + $0x18] sm:$0x11] }
  0x5d   : > { %1208 = vperm.xlu1 %2699, %v1186_v38   ;;  %v820_v8 = vld [vmem:[%s3749_s29 + $0x10] sm:$0x3]  ;;  %v2767_v11 = vld [vmem:[%s3744_s30] ss:$12 sps:$4 sm:$0xff]   ;;  %v2523_v14 = vcombine.high %v816_v10, %v816_v10  ;;  %v2522_v17 = vcombine.low %v816_v10, %v816_v10  ;;  %v1792_v20 = vld [vmem:[%s3691_s13 + $0x38] sm:$0xff] }
  0x5e   : > { %1193 = vperm.xlu0 %2698, %v1183_v43   ;;  %v1558_v12 = vld [vmem:[%s3750_s9 + $0x10] sm:$0x3]  ;;  %v818_v13 = vld [vmem:[%s3749_s29] sm:$0xff]  ;;  %v819_v15 = vld [vmem:[%s3749_s29 + $0x8] sm:$0xff] }
  0x5f   : > { %2566 = vmatmul.mubr.msk.bf16.gmra.mxu1 %vm1061_vm0, %v2733_v28  ;;  %1081 = vmatpush1.bf16.msra.mxu0 %v2734_v29  ;;  %v1556_v16 = vld [vmem:[%s3750_s9] sm:$0xff]  ;;  %v1557_v18 = vld [vmem:[%s3750_s9 + $0x8] sm:$0xff]  ;;  %v1791_v19 = vld [vmem:[%s3691_s13 + $0x30] sm:$0xff] }
  0x60   : > { %1303 = vmatprep.mubr.bf16.mxu1 %v2967_v0  ;;  %1082 = vmatprep.subr.bf16.mxu0 %v2735_v30  ;;  %v1789_v22 = vld [vmem:[%s3691_s13 + $0x20] sm:$0xff]  ;;  %v1790_v23 = vld [vmem:[%s3691_s13 + $0x28] sm:$0xff]  ;;  %v1787_v24 = vld [vmem:[%s3691_s13 + $0x10] sm:$0xff] }
  0x61   : > { %1198 = vperm.xlu1 %2699, %v1184_v42   ;;  %v1788_v25 = vld [vmem:[%s3691_s13 + $0x18] sm:$0xff]  ;;  %v1785_v26 = vld [vmem:[%s3691_s13] sm:$0xff]  ;;  %v1786_v27 = vld [vmem:[%s3691_s13 + $0x8] sm:$0xff] }
  0x62   : > { %1416 = vperm.xlu0 %2698, %v1382_v49   ;;  %v1983_v28 = vld [vmem:[%s3693_s15 + $0x30] sm:$0xff]  ;;  %v1984_v29 = vld [vmem:[%s3693_s15 + $0x38] sm:$0xff]  ;;  %v1981_v30 = vld [vmem:[%s3693_s15 + $0x20] sm:$0xff] }
  0x63   : > { %1083 = vmatpush1.bf16.msra.mxu0 %v2738_v33  ;;  %v1982_v31 = vld [vmem:[%s3693_s15 + $0x28] sm:$0xff]  ;;  %v1979_v32 = vld [vmem:[%s3693_s15 + $0x10] sm:$0xff]  ;;  %v1980_v33 = vld [vmem:[%s3693_s15 + $0x18] sm:$0xff] }
  0x64   : > { %1084 = vmatprep.subr.bf16.mxu0 %v2739_v36  ;;  %v1977_v34 = vld [vmem:[%s3693_s15] sm:$0xff]  ;;  %v1978_v35 = vld [vmem:[%s3693_s15 + $0x8] sm:$0xff] }
  0x65   : > { %1421 = vperm.xlu1 %2699, %v1383_v48   ;;  %v2206_v36 = vld [vmem:[%s3697_s19] sm:$0x3] }
  0x66   : > { %1406 = vperm.xlu0 %2698, %v1380_v53  }
  0x67   : > { %2572 = vmatmul.mubr.msk.bf16.vlgmr.msra.gmra.mxu1 %vm1251_vm2, %v2741_v37  ;;  %1085 = vmatpush2.bf16.msra.mxu0 %v2742_v40  ;;  %v2155_v37 = vld [vmem:[%s3695_s17] sm:$0x3] }
  0x68   : > { %1313 = vmatprep.mubr.bf16.mxu1 %v2967_v0  ;;  %1086 = vmatprep.subr.bf16.mxu0 %v2743_v41 }
  0x69   : > { %1411 = vperm.xlu1 %2699, %v1381_v52  }
  0x6a   : > { %1396 = vperm.xlu0 %2698, %v1378_v58  }
  0x6b   : > { %1087 = vmatpush2.bf16.msra.mxu0 %v2745_v44 }
  0x6c   : > { %1088 = vmatprep.subr.bf16.mxu0 %v2746_v45 }
  0x6d   : > { %1401 = vperm.xlu1 %2699, %v1379_v57  }
  0x6e   : > { %1386 = vperm.xlu0 %2698, %v1376_v62  }
  0x6f   : > { %2573 = vmatmul.mubr.msk.bf16.gmra.mxu1 %vm1251_vm2, %v2748_v47  ;;  %1089 = vmatpush2.bf16.msra.mxu0 %v2749_v50 }
  0x70   : > { %1323 = vmatprep.mubr.bf16.mxu1 %v2967_v0  ;;  %1090 = vmatprep.subr.bf16.mxu0 %v2750_v51 }
  0x71   : > { %1391 = vperm.xlu1 %2699, %v1377_v61  }
  0x72   : > { %1657 = vperm.xlu0 %2698, %v1644_v4  }
  0x73   : > { %1091 = vmatpush2.bf16.msra.mxu0 %v2752_v54 }
  0x74   : > { %1092 = vmatprep.subr.bf16.mxu0 %v2753_v55 }
  0x75   : > { %1647 = vperm.xlu1 %2699, %v1642_v3  }
  0x76   : > { %1652 = vperm.xlu0 %2698, %v1643_v7  }
  0x77   : > { %2574 = vmatmul.mubr.msk.bf16.gmra.mxu1 %vm1251_vm2, %v2755_v56  ;;  %1093 = vmatpush2.bf16.msra.mxu0 %v2756_v59 }
  0x78   : > { %1333 = vmatprep.mubr.bf16.mxu1 %v2967_v0  ;;  %1094 = vmatprep.subr.bf16.mxu0 %v2757_v60 }
  0x79   : > { %833 = vperm.xlu1 %2699, %v820_v8  }
  0x7a   : > { %1571 = vperm.xlu0 %2698, %v1558_v12  }
  0x7b   : > { %1095 = vmatpush2.bf16.msra.mxu0 %v2759_v63 }
  0x7c   : > { %1096 = vmatprep.subr.bf16.mxu0 %v2760_v1 }
  0x7d   : > { %823 = vperm.xlu1 %2699, %v818_v13  }
  0x7e   : > { %828 = vperm.xlu0 %2698, %v819_v15  }
  0x7f   : > { %2575 = vmatmul.mubr.msk.bf16.gmra.mxu1 %vm1251_vm2, %v2762_v2  ;;  %1097 = vmatpush2.bf16.msra.mxu0 %v2763_v5 }
  0x80   : > { %1488 = vmatprep.mubr.bf16.mxu1 %v2967_v0  ;;  %1098 = vmatprep.subr.bf16.mxu0 %v2764_v6 }
  0x81   : > { %1561 = vperm.xlu1 %2699, %v1556_v16  }
  0x82   : > { %1566 = vperm.xlu0 %2698, %v1557_v18  }
  0x83   : > { %1099 = vmatpush2.bf16.msra.mxu0 %v2766_v9 }
  0x85   : > { %1825 = vperm.xlu1 %2699, %v1791_v19  }
  0x86   : > { %1101 = vmatmul.mubr.bf16.vlgmr.msra.gmra.mxu0 %v2767_v11  ;;  %1830 = vperm.xlu0 %2698, %v1792_v20  }
  0x87   : > { %1110 = vmatprep.mubr.bf16.mxu0 %v2523_v14 }
  0x89   : > { %1815 = vperm.xlu1 %2699, %v1789_v22  }
  0x8a   : > { %1820 = vperm.xlu0 %2698, %v1790_v23  }
  0x8d   : > { %1805 = vperm.xlu1 %2699, %v1787_v24  }
  0x8e   : > { %1111 = vmatmul.mubr.bf16.gmra.mxu0 %v2522_v17  ;;  %1810 = vperm.xlu0 %2698, %v1788_v25  }
  0x8f   : > { %1620 = vmatprep.mubr.bf16.mxu0 %v2967_v0 }
  0x91   : > { %1795 = vperm.xlu1 %2699, %v1785_v26  }
  0x92   : > { %1800 = vperm.xlu0 %2698, %v1786_v27  }
  0x95   : > { %2017 = vperm.xlu1 %2699, %v1983_v28  }
  0x96   : > { %2022 = vperm.xlu0 %2698, %v1984_v29  }
  0x99   : > { %2007 = vperm.xlu1 %2699, %v1981_v30  }
  0x9a   : > { %2012 = vperm.xlu0 %2698, %v1982_v31  }
  0x9d   : > { %1997 = vperm.xlu1 %2699, %v1979_v32  }
  0x9e   : > { %2002 = vperm.xlu0 %2698, %v1980_v33  }
  0xa1   : > { %1987 = vperm.xlu1 %2699, %v1977_v34  }
  0xa2   : > { %1992 = vperm.xlu0 %2698, %v1978_v35  }
  0xa5   : > { %2209 = vperm.xlu1 %2699, %v2206_v36  }
  0xa9   : > { %2158 = vperm.xlu1 %2699, %v2155_v37  }
  0xcd   : > { %v1224_v38 = vpop.permute.xlu0 %1223 }
  0xce   : > { %v1214_v39 = vpop.permute.xlu1 %1213 }
  0xd1   : > { %v1229_v40 = vpop.permute.xlu0 %1228 }
  0xd4   : > { %v1219_v41 = vpop.permute.xlu1 %1218 }
  0xd5   : > { %v3401_v42 = vpop.permute.xlu0 %1203 }
  0xd8   : > { %v3403_v43 = vpop.permute.xlu1 %1208 }
  0xd9   : > { %v3407_v46 = vpop.permute.xlu0 %1193 }
  0xdc   : > { %v3411_v48 = vpop.permute.xlu1 %1198 }
  0xdd   : > { %v3417_v51 = vpop.permute.xlu0 %1416 }
  0xe0   : > { %v3421_v53 = vpop.permute.xlu1 %1421 }
  0xe1   : > { %v3423_v56 = vpop.permute.xlu0 %1406 }
  0xe4   : > { %v3427_v58 = vpop.permute.xlu1 %1411 }
  0xe5   : > { %v3431_v61 = vpop.permute.xlu0 %1396 }
  0xe8   : > { %v3433_v63 = vpop.permute.xlu1 %1401 }
  0xe9   : > { %v3435_v3 = vpop.permute.xlu0 %1386 }
  0xec   : > { %v3437_v5 = vpop.permute.xlu1 %1391 }
  0xed   : > { %v3439_v8 = vpop.permute.xlu0 %1657 }
  0xf0   : > { %v3441_v10 = vpop.permute.xlu1 %1647 }
  0xf1   : > { %v3443_v13 = vpop.permute.xlu0 %1652 }
  0xf4   : > { %v834_v15 = vpop.permute.xlu1 %833 }
  0xf5   : > { %v3445_v22 = vpop.permute.xlu0 %1571 }
  0xf8   : > { %v824_v27 = vpop.permute.xlu1 %823 }
 0x117   : > { %v1153_v44 = vpop.f32.mrf.mxu1 }
 0x119   : > { %v3405_v45 = vpop.f32.mrf.mxu1 }
 0x11b   : > { %v3409_v47 = vpop.f32.mrf.mxu1 }
 0x11d   : > { %v3413_v49 = vpop.f32.mrf.mxu1 }
 0x11f   : > { %v3415_v50 = vpop.f32.mrf.mxu1 }
 0x121   : > { %v3419_v52 = vpop.f32.mrf.mxu1 }
 0x123   : > { %v1167_v54 = vpop.f32.mrf.mxu1 }
 0x125   : > { %v1168_v55 = vpop.f32.mrf.mxu1 }
 0x127   : > { %v3425_v57 = vpop.f32.mrf.mxu1 }
 0x129   : > { %v1307_v59 = vpop.f32.mrf.mxu1 }
 0x12b   : > { %v3429_v60 = vpop.f32.mrf.mxu1 }
 0x12d   : > { %v1311_v62 = vpop.f32.mrf.mxu1 }
 0x12f   : > { %v1315_v1 = vpop.f32.mrf.mxu1 }
 0x131   : > { %v1317_v2 = vpop.f32.mrf.mxu1 }
 0x132   : > { %v1318_v36 = vadd.f32 %v1317_v2, %v3401_v42 }
 0x133   : > { %v1319_v4 = vpop.f32.mrf.mxu1 }
 0x135   : > { %v1321_v6 = vpop.f32.mrf.mxu1 }
 0x136   : > { %v1322_v28 = vadd.f32 %v1321_v6, %v3403_v43  ;;  %v1312_v6 = vadd.f32 %v1311_v62, %v3411_v48  ;;  %v1349_v62 = vmax.f32 %v1318_v36, 0.0 }
 0x137   : > { %v1325_v7 = vpop.f32.mrf.mxu1 }
 0x138   : > { %v1326_v37 = vadd.f32 %v1325_v7, %v1214_v39  ;;  %v1316_v7 = vadd.f32 %v1315_v1, %v3401_v42 }
 0x139   : > { %v1327_v9 = vpop.f32.mrf.mxu1 }
 0x13a   : > { %v1328_v25 = vadd.f32 %v1327_v9, %v1214_v39  ;;  %v829_v9 = vpop.permute.xlu0 %828 }
 0x13b   : > { %v1329_v11 = vpop.f32.mrf.mxu1 }
 0x13c   : > { %v1330_v29 = vadd.f32 %v1329_v11, %v1219_v41 }
 0x13d   : > { %v1331_v12 = vpop.f32.mrf.mxu1 }
 0x13e   : > { %v1332_v18 = vadd.f32 %v1331_v12, %v1219_v41  ;;  %v1353_v12 = vmax.f32 %v1328_v25, 0.0  ;;  %v1320_v41 = vadd.f32 %v1319_v4, %v3403_v43  ;;  %v1354_v11 = vmax.f32 %v1330_v29, 0.0 }
 0x13f   : > { %v1335_v14 = vpop.f32.mrf.mxu1  ;;  %v1348_v29 = vmax.f32 %v1316_v7, 0.0 }
 0x140   : > { %v1336_v23 = vadd.f32 %v1335_v14, %v1224_v38  ;;  %v1355_v32 = vmax.f32 %v1332_v18, 0.0  ;;  %v1351_v18 = vmax.f32 %v1322_v28, 0.0 }
 0x141   : > { %v1337_v16 = vpop.f32.mrf.mxu1 }
 0x142   : > { %v1338_v19 = vadd.f32 %v1337_v16, %v1224_v38  ;;  %v1356_v54 = vmax.f32 %v1336_v23, 0.0  ;;  %v1308_v23 = vadd.f32 %v1307_v59, %v3407_v46  ;;  %v1363_v28 = vpack.c.bf16 %v1351_v18, %v1349_v62 }
 0x143   : > { %v1339_v17 = vpop.f32.mrf.mxu1  ;;  %v1306_v59 = vadd.f32 %v3425_v57, %v3407_v46  ;;  %v2772_v57 = vld [vmem:[%s3751_s6] sm:$0xff]  }
 0x144   : > { %v1340_v20 = vadd.f32 %v1339_v17, %v1229_v40  ;;  %v1357_v33 = vmax.f32 %v1338_v19, 0.0  ;;  %v1365_v19 = vpack.c.bf16 %v1355_v32, %v1353_v12 }
 0x145   : > { %v1341_v24 = vpop.f32.mrf.mxu1 }
 0x146   : > { %v1342_v26 = vadd.f32 %v1341_v24, %v1229_v40  ;;  %v1358_v30 = vmax.f32 %v1340_v20, 0.0  ;;  %v1102_v31 = vpop.f32.mrf.mxu0  ;;  %v1310_v24 = vadd.f32 %v3429_v60, %v3411_v48 }
 0x147   : > { %v1103_v35 = vadd.f32 %v1102_v31, %v824_v27 }
 0x148   : > { %v1359_v34 = vmax.f32 %v1342_v26, 0.0  ;;  %v1104_v55 = vpop.f32.mrf.mxu0  ;;  %v1366_v16 = vpack.c.bf16 %v1358_v30, %v1356_v54  ;;  %v1345_v30 = vmax.f32 %v1308_v23, 0.0  ;;  %v1346_v60 = vmax.f32 %v1310_v24, 0.0 }
 0x149   : > { %v3449_v14 = vadd.f32 %v1153_v44, %v1103_v35  ;;  %v1105_v40 = vadd.f32 %v1104_v55, %v824_v27  ;;  %v1352_v44 = vmax.f32 %v1326_v37, 0.0  ;;  %v1347_v27 = vmax.f32 %v1312_v6, 0.0 }
 0x14a   : > { %v1367_v38 = vpack.c.bf16 %v1359_v34, %v1357_v33  ;;  %v1106_v17 = vpop.f32.mrf.mxu0  ;;  %v1344_v35 = vmax.f32 %v1306_v59, 0.0 }
 0x14b   : > { %v3454_v2 = vadd.f32 %v3405_v45, %v1105_v40  ;;  %v1107_v39 = vadd.f32 %v1106_v17, %v829_v9  ;;  %v1350_v45 = vmax.f32 %v1320_v41, 0.0  ;;  %v1364_v25 = vpack.c.bf16 %v1354_v11, %v1352_v44 }
 0x14c   : > { %1464 = vmatprep.subr.bf16.mxu1 %v1367_v38  ;;  %v1108_v20 = vpop.f32.mrf.mxu0  ;;  %v1361_v34 = vpack.c.bf16 %v1347_v27, %v1345_v30  ;;  %v1360_v46 = vpack.c.bf16 %v1346_v60, %v1344_v35 }
 0x14d   : > { %1465 = vmatpush1.bf16.msra.mxu1 %v1366_v16  ;;  %v3459_v43 = vadd.f32 %v3409_v47, %v1107_v39  ;;  %v1109_v4 = vadd.f32 %v1108_v20, %v829_v9  ;;  %v1362_v32 = vpack.c.bf16 %v1350_v45, %v1348_v29 }
 0x14e   : > { %1466 = vmatprep.subr.bf16.mxu1 %v1365_v19  ;;  %v1112_v26 = vpop.f32.mrf.mxu0 }
 0x14f   : > { %v3464_v42 = vadd.f32 %v3413_v49, %v1109_v4  ;;  %v1113_v1 = vadd.f32 %v1112_v26, %v834_v15 }
 0x150   : > { %v1114_v47 = vpop.f32.mrf.mxu0 }
 0x151   : > { %1467 = vmatpush1.bf16.msra.mxu1 %v1364_v25  ;;  %v3469_v31 = vadd.f32 %v3415_v50, %v1113_v1  ;;  %v1115_v48 = vadd.f32 %v1114_v47, %v834_v15  ;;  %v2773_v50 = vld [vmem:[%s3751_s6 + $0x8] sm:$0xff]   ;;  %v2775_v15 = vld [vmem:[%s3751_s6 + $0x18] sm:$0xff]  }
 0x152   : > { %1468 = vmatprep.subr.bf16.mxu1 %v1363_v28  ;;  %v1116_v33 = vpop.f32.mrf.mxu0 }
 0x153   : > { %v3472_v49 = vadd.f32 %v3419_v52, %v1115_v48  ;;  %v2774_v52 = vld [vmem:[%s3751_s6 + $0x10] sm:$0xff]   ;;  %s2856_s6 = sshll.u32 %s2970_s22, 4  ;;  %s2857_s6 = int_to_ptr.vmem [resolvable:$false] %s2856_s6 }
 0x154   : > { %v1117_v36 = vpop.f32.mrf.mxu0  ;;  %s2858_s7 = scalar_lea.vmem %s2857_s6, 256  ;;  %p2859_p3 = scmp.lt.s32.totalorder %s2356_s20, %s2857_s6 }
 0x155   : > { %1469 = vmatpush1.bf16.msra.mxu1 %v1362_v32 }
 0x156   : > { %1470 = vmatprep.subr.bf16.mxu1 %v1361_v34 }
 0x159   : > { %1471 = vmatpush1.bf16.msra.mxu1 %v1360_v46 }
 0x15c   : > { %2580 = vmatmul.mubr.msk.bf16.vlgmr.msra.gmra.mxu1 %vm1061_vm0, %v2772_v57 }
 0x15d   : > { %1498 = vmatprep.mubr.bf16.mxu1 %v2967_v0 }
 0x164   : > { %2581 = vmatmul.mubr.msk.bf16.gmra.mxu1 %vm1061_vm0, %v2773_v50 }
 0x165   : > { %1508 = vmatprep.mubr.bf16.mxu1 %v2967_v0 }
 0x16c   : > { %2582 = vmatmul.mubr.msk.bf16.gmra.mxu1 %vm1061_vm0, %v2774_v52 }
 0x16d   : > { %1518 = vmatprep.mubr.bf16.mxu1 %v2967_v0 }
 0x174   : > { %2583 = vmatmul.mubr.msk.bf16.gmra.mxu1 %vm1061_vm0, %v2775_v15 }
 0x175   : > { %1904 = vmatprep.mubr.bf16.mxu1 %v2967_v0 }
 0x21c   : > { %v1490_v37 = vpop.f32.mrf.mxu1 }
 0x21d   : > { %v1491_v15 = vadd.f32 %v1490_v37, %v3435_v3  ;;  %v2778_v37 = vld [vmem:[%s3753_s10] sm:$0xff]  }
 0x21e   : > { %v1492_v54 = vpop.f32.mrf.mxu1 }
 0x220   : > { %v1494_v55 = vpop.f32.mrf.mxu1 }
 0x221   : > { %v1495_v46 = vadd.f32 %v1494_v55, %v3437_v5  ;;  %v2779_v55 = vld [vmem:[%s3753_s10 + $0x8] ss:$0 sps:$4 sm:$0x11]  }
 0x222   : > { %v1496_v12 = vpop.f32.mrf.mxu1 }
 0x224   : > { %v1500_v38 = vpop.f32.mrf.mxu1 }
 0x225   : > { %v1501_v34 = vadd.f32 %v1500_v38, %v3431_v61 }
 0x226   : > { %v1502_v40 = vpop.f32.mrf.mxu1 }
 0x227   : > { %v1503_v47 = vadd.f32 %v1502_v40, %v3431_v61 }
 0x228   : > { %v1504_v9 = vpop.f32.mrf.mxu1 }
 0x229   : > { %v1505_v48 = vadd.f32 %v1504_v9, %v3433_v63  ;;  %v1534_v36 = vmax.f32 %v1503_v47, 0.0  ;;  %v1531_v9 = vmax.f32 %v1495_v46, 0.0 }
 0x22a   : > { %v1506_v6 = vpop.f32.mrf.mxu1 }
 0x22b   : > { %v1507_v26 = vadd.f32 %v1506_v6, %v3433_v63  ;;  %v1535_v57 = vmax.f32 %v1505_v48, 0.0  ;;  %v1529_v6 = vmax.f32 %v1491_v15, 0.0 }
 0x22c   : > { %v1510_v41 = vpop.f32.mrf.mxu1 }
 0x22d   : > { %v1511_v59 = vadd.f32 %v1510_v41, %v3423_v56  ;;  %v3530_v41 = vpop.permute.xlu1 %1561 }
 0x22e   : > { %v1512_v11 = vpop.f32.mrf.mxu1 }
 0x22f   : > { %v1513_v4 = vadd.f32 %v1512_v11, %v3423_v56  ;;  %v1537_v35 = vmax.f32 %v1511_v59, 0.0  ;;  %v1493_v56 = vadd.f32 %v1492_v54, %v3435_v3  ;;  %v1545_v54 = vpack.c.bf16 %v1531_v9, %v1529_v6  ;;  %v2777_v3 = vld [vmem:[%s3752_s8 + $0x8] ss:$0 sps:$4 sm:$0x11]   ;;  %v1567_v6 = vpop.permute.xlu0 %1566 }
 0x230   : > { %v1514_v16 = vpop.f32.mrf.mxu1 }
 0x231   : > { %v1515_v45 = vadd.f32 %v1514_v16, %v3427_v58  ;;  %v1538_v30 = vmax.f32 %v1513_v4, 0.0  ;;  %v1530_v40 = vmax.f32 %v1493_v56, 0.0 }
 0x232   : > { %v1516_v17 = vpop.f32.mrf.mxu1 }
 0x233   : > { %v1517_v7 = vadd.f32 %v1516_v17, %v3427_v58  ;;  %v1539_v60 = vmax.f32 %v1515_v45, 0.0  ;;  %v1536_v58 = vmax.f32 %v1507_v26, 0.0 }
 0x234   : > { %v1520_v18 = vpop.f32.mrf.mxu1 }
 0x235   : > { %v1521_v23 = vadd.f32 %v1520_v18, %v3417_v51  ;;  %v1540_v27 = vmax.f32 %v1517_v7, 0.0  ;;  %v1549_v50 = vpack.c.bf16 %v1539_v60, %v1537_v35  ;;  %v1548_v52 = vpack.c.bf16 %v1536_v58, %v1534_v36 }
 0x236   : > { %v1522_v19 = vpop.f32.mrf.mxu1 }
 0x237   : > { %v1523_v44 = vadd.f32 %v1522_v19, %v3417_v51  ;;  %v1541_v29 = vmax.f32 %v1521_v23, 0.0  ;;  %v1550_v33 = vpack.c.bf16 %v1540_v27, %v1538_v30 }
 0x238   : > { %v1524_v39 = vpop.f32.mrf.mxu1 }
 0x239   : > { %v1525_v20 = vadd.f32 %v1524_v39, %v3421_v53  ;;  %v1542_v28 = vmax.f32 %v1523_v44, 0.0 }
 0x23a   : > { %v1526_v62 = vpop.f32.mrf.mxu1 }
 0x23b   : > { %v1527_v24 = vadd.f32 %v1526_v62, %v3421_v53  ;;  %v1543_v25 = vmax.f32 %v1525_v20, 0.0  ;;  %v1497_v53 = vadd.f32 %v1496_v12, %v3437_v5  ;;  %v1533_v12 = vmax.f32 %v1501_v34, 0.0  ;;  %v2776_v5 = vld [vmem:[%s3752_s8] sm:$0xff]  }
 0x23d   : > { %v1544_v1 = vmax.f32 %v1527_v24, 0.0  ;;  %v1551_v32 = vpack.c.bf16 %v1543_v25, %v1541_v29  ;;  %v1532_v63 = vmax.f32 %v1497_v53, 0.0  ;;  %v1547_v61 = vpack.c.bf16 %v1535_v57, %v1533_v12 }
 0x23f   : > { %v1552_v51 = vpack.c.bf16 %v1544_v1, %v1542_v28  ;;  %v1546_v38 = vpack.c.bf16 %v1532_v63, %v1530_v40 }
 0x241   : > { %1596 = vmatprep.subr.bf16.mxu0 %v1552_v51 }
 0x242   : > { %1597 = vmatpush1.bf16.msra.mxu0 %v1551_v32 }
 0x243   : > { %1598 = vmatprep.subr.bf16.mxu0 %v1550_v33 }
 0x246   : > { %1599 = vmatpush1.bf16.msra.mxu0 %v1549_v50 }
 0x247   : > { %1600 = vmatprep.subr.bf16.mxu0 %v1548_v52 }
 0x24a   : > { %1601 = vmatpush1.bf16.msra.mxu0 %v1547_v61 }
 0x24b   : > { %1602 = vmatprep.subr.bf16.mxu0 %v1546_v38 }
 0x24e   : > { %1603 = vmatpush1.bf16.msra.mxu0 %v1545_v54 }
 0x24f   : > { %1682 = vmatprep.subr.bf16.mxu0 %v1552_v51 }
 0x251   : > { %2586 = vmatmul.mubr.msk.bf16.vlgmr.msra.gmra.mxu0 %vm1061_vm0, %v2776_v5 }
 0x252   : > { %1683 = vmatpush1.bf16.msra.mxu0 %v1551_v32  ;;  %1630 = vmatprep.mubr.bf16.mxu0 %v2967_v0 }
 0x253   : > { %1684 = vmatprep.subr.bf16.mxu0 %v1550_v33 }
 0x256   : > { %1685 = vmatpush1.bf16.msra.mxu0 %v1549_v50 }
 0x257   : > { %1686 = vmatprep.subr.bf16.mxu0 %v1548_v52 }
 0x259   : > { %2587 = vmatmul.mubr.msk.bf16.gmra.mxu0 %vm1061_vm0, %v2777_v3 }
 0x25a   : > { %1687 = vmatpush1.bf16.msra.mxu0 %v1547_v61  ;;  %1706 = vmatprep.mubr.bf16.mxu0 %v2967_v0 }
 0x25b   : > { %1688 = vmatprep.subr.bf16.mxu0 %v1546_v38 }
 0x25e   : > { %1689 = vmatpush1.bf16.msra.mxu0 %v1545_v54 }
 0x261   : > { %2590 = vmatmul.mubr.msk.bf16.vlgmr.msra.gmra.mxu0 %vm1061_vm0, %v2778_v37 }
 0x262   : > { %1716 = vmatprep.mubr.bf16.mxu0 %v2967_v0 }
 0x269   : > { %2591 = vmatmul.mubr.msk.bf16.gmra.mxu0 %vm1061_vm0, %v2779_v55 }
 0x26a   : > { %2089 = vmatprep.mubr.bf16.mxu0 %v2967_v0 }
 0x311   : > { %v1622_v11 = vpop.f32.mrf.mxu0 }
 0x312   : > { %v1623_v16 = vadd.f32 %v1622_v11, %v3530_v41 }
 0x313   : > { %v1624_v17 = vpop.f32.mrf.mxu0 }
 0x314   : > { %v3534_v18 = vadd.f32 %v1623_v16, %v3449_v14  ;;  %v1625_v3 = vadd.f32 %v1624_v17, %v3530_v41 }
 0x315   : > { %v1626_v19 = vpop.f32.mrf.mxu0 }
 0x316   : > { %v1627_v54 = vadd.f32 %v1626_v19, %v1567_v6 }
 0x317   : > { %v1628_v39 = vpop.f32.mrf.mxu0 }
 0x318   : > { %v1629_v37 = vadd.f32 %v1628_v39, %v1567_v6 }
 0x319   : > { %v1632_v7 = vpop.f32.mrf.mxu0 }
 0x31a   : > { %v1633_v16 = vadd.f32 %v1632_v7, %v3445_v22 }
 0x31b   : > { %v3536_v44 = vpop.f32.mrf.mxu0 }
 0x31c   : > { %v1635_v19 = vadd.f32 %v3536_v44, %v3445_v22  ;;  %v2782_v44 = vld [vmem:[%s3690_s12 + $0x10] sm:$0xff]  }
 0x31d   : > { %v1636_v20 = vpop.f32.mrf.mxu0 }
 0x31e   : > { %v1763_v20 = vadd.f32 %v1627_v54, %v3459_v43 }
 0x31f   : > { %v1637_v23 = vpop.f32.mrf.mxu0 }
 0x321   : > { %v1708_v62 = vpop.f32.mrf.mxu0 }
 0x322   : > { %v1709_v4 = vadd.f32 %v1708_v62, %v3441_v10 }
 0x323   : > { %v1710_v24 = vpop.f32.mrf.mxu0 }
 0x324   : > { %v1725_v45 = vsub.f32 0.0, %v1709_v4  ;;  %v1711_v25 = vadd.f32 %v1710_v24, %v3441_v10  ;;  %v1762_v24 = vadd.f32 %v1625_v3, %v3454_v2 }
 0x325   : > { %v1712_v26 = vpop.f32.mrf.mxu0 }
 0x326   : > { %v1731_v27 = vmul.f32 1.442695, %v1725_v45  ;;  %v1726_v28 = vsub.f32 0.0, %v1711_v25  ;;  %v1713_v14 = vadd.f32 %v1712_v26, %v3443_v13  ;;  %v1764_v45 = vadd.f32 %v1629_v37, %v3464_v42 }
 0x327   : > { %v1714_v1 = vpop.f32.mrf.mxu0  ;;  %v1765_v26 = vadd.f32 %v1633_v16, %v3469_v31  ;;  %v2780_v31 = vld [vmem:[%s3690_s12] sm:$0xff]  }
 0x328   : > { %2788 = vpow2.f32 %v1731_v27  ;;  %v1733_v59 = vmul.f32 1.442695, %v1726_v28  ;;  %v1727_v29 = vsub.f32 0.0, %v1713_v14  ;;  %v1715_v47 = vadd.f32 %v1714_v1, %v3443_v13 }
 0x329   : > { %v1718_v30 = vpop.f32.mrf.mxu0  ;;  %v1766_v1 = vadd.f32 %v1635_v19, %v3472_v49  ;;  %v2781_v49 = vld [vmem:[%s3690_s12 + $0x8] sm:$0xff]  }
 0x32a   : > { %2790 = vpow2.f32 %v1733_v59  ;;  %v1735_v51 = vmul.f32 1.442695, %v1727_v29  ;;  %v1728_v48 = vsub.f32 0.0, %v1715_v47  ;;  %v1719_v60 = vadd.f32 %v1718_v30, %v3439_v8  ;;  %v2783_v30 = vld [vmem:[%s3690_s12 + $0x18] sm:$0xff]  }
 0x32b   : > { %v1720_v32 = vpop.f32.mrf.mxu0 }
 0x32c   : > { %2792 = vpow2.f32 %v1735_v51  ;;  %v1737_v10 = vmul.f32 1.442695, %v1728_v48  ;;  %v1729_v53 = vsub.f32 0.0, %v1719_v60  ;;  %v1721_v58 = vadd.f32 %v1720_v32, %v3439_v8 }
 0x32d   : > { %v1722_v33 = vpop.f32.mrf.mxu0 }
 0x32e   : > { %2794 = vpow2.f32 %v1737_v10  ;;  %v1739_v34 = vmul.f32 1.442695, %v1729_v53  ;;  %v1730_v35 = vsub.f32 0.0, %v1721_v58 }
 0x32f   : > { %v1723_v56 = vpop.f32.mrf.mxu0 }
 0x330   : > { %2796 = vpow2.f32 %v1739_v34  ;;  %v1741_v36 = vmul.f32 1.442695, %v1730_v35  ;;  %v1831_v35 = vpop.permute.xlu0 %1830 }
 0x332   : > { %2798 = vpow2.f32 %v1741_v36  ;;  %v1826_v36 = vpop.permute.xlu1 %1825 }
 0x335   : > { %v2789_v13 = vpop.eup %2788 }
 0x336   : > { %v1743_v46 = vadd.f32 1.0, %v2789_v13 }
 0x337   : > { %v2791_v57 = vpop.eup %2790 }
 0x338   : > { %2800 = vrcp.f32 %v1743_v46  ;;  %v1744_v50 = vadd.f32 1.0, %v2791_v57  ;;  %v1821_v57 = vpop.permute.xlu0 %1820 }
 0x339   : > { %v2793_v63 = vpop.eup %2792 }
 0x33a   : > { %2802 = vrcp.f32 %v1744_v50  ;;  %v1745_v52 = vadd.f32 1.0, %v2793_v63  ;;  %v1816_v63 = vpop.permute.xlu1 %1815 }
 0x33b   : > { %v2795_v15 = vpop.eup %2794 }
 0x33c   : > { %2804 = vrcp.f32 %v1745_v52  ;;  %v1746_v12 = vadd.f32 1.0, %v2795_v15 }
 0x33d   : > { %v2797_v8 = vpop.eup %2796 }
 0x33e   : > { %2806 = vrcp.f32 %v1746_v12  ;;  %v1747_v40 = vadd.f32 1.0, %v2797_v8 }
 0x33f   : > { %v2799_v9 = vpop.eup %2798 }
 0x340   : > { %2808 = vrcp.f32 %v1747_v40  ;;  %v1748_v61 = vadd.f32 1.0, %v2799_v9  ;;  %v1811_v9 = vpop.permute.xlu0 %1810 }
 0x342   : > { %2810 = vrcp.f32 %v1748_v61 }
 0x344   : > { %v1801_v19 = vpop.permute.xlu0 %1800 }
 0x345   : > { %v2801_v38 = vpop.eup %2800 }
 0x346   : > { %v1755_v55 = vadd.f32 0.0001, %v2801_v38 }
 0x347   : > { %v2803_v5 = vpop.eup %2802 }
 0x348   : > { %v1756_v62 = vadd.f32 0.0001, %v2803_v5  ;;  %v1767_v41 = vmul.f32 %v3534_v18, %v1755_v55  ;;  %v1806_v5 = vpop.permute.xlu1 %1805 }
 0x349   : > { %v2805_v11 = vpop.eup %2804 }
 0x34a   : > { %v1757_v23 = vadd.f32 0.0001, %v2805_v11  ;;  %v1768_v27 = vmul.f32 %v1762_v24, %v1756_v62 }
 0x34b   : > { %v2807_v4 = vpop.eup %2806 }
 0x34c   : > { %v1758_v25 = vadd.f32 0.0001, %v2807_v4  ;;  %v1769_v17 = vmul.f32 %v1763_v20, %v1757_v23 }
 0x34d   : > { %v2809_v39 = vpop.eup %2808 }
 0x34e   : > { %v1759_v7 = vadd.f32 0.0001, %v2809_v39  ;;  %v1770_v43 = vmul.f32 %v1764_v45, %v1758_v25  ;;  %v1773_v28 = vpack.c.bf16 %v1769_v17, %v1767_v41 }
 0x34f   : > { %v2811_v14 = vpop.eup %2810 }
 0x350   : > { %v1760_v2 = vadd.f32 0.0001, %v2811_v14  ;;  %v1771_v59 = vmul.f32 %v1765_v26, %v1759_v7  ;;  %v1774_v42 = vpack.c.bf16 %v1770_v43, %v1768_v27  ;;  %v1796_v27 = vpop.permute.xlu1 %1795 }
 0x352   : > { %v1772_v29 = vmul.f32 %v1766_v1, %v1760_v2  ;;  %v1775_v47 = vpack.c.bf16 %v1771_v59, %v1771_v59 }
 0x354   : > { %v1776_v22 = vpack.c.bf16 %v1772_v29, %v1772_v29  ;;  %v1867_v18 = vsel %vm1264_vm1, %v1775_v47, 0 }
 0x356   : > { %2596 = vmatprep.subr.msk.bf16.mxu1 %vm1264_vm1, %v1776_v22 }
 0x357   : > { %1885 = vmatpush1.bf16.msra.mxu1 %v1867_v18 }
 0x358   : > { %1886 = vmatprep.subr.bf16.mxu1 %v1774_v42 }
 0x35b   : > { %1887 = vmatpush1.bf16.msra.mxu1 %v1773_v28 }
 0x35e   : > { %2597 = vmatmul.mubr.msk.bf16.vlgmr.msra.gmra.mxu1 %vm1853_vm3, %v2780_v31 }
 0x35f   : > { %1914 = vmatprep.mubr.bf16.mxu1 %v2967_v0 }
 0x366   : > { %2598 = vmatmul.mubr.msk.bf16.gmra.mxu1 %vm1853_vm3, %v2781_v49 }
 0x367   : > { %1924 = vmatprep.mubr.bf16.mxu1 %v2967_v0 }
 0x36e   : > { %2599 = vmatmul.mubr.msk.bf16.gmra.mxu1 %vm1853_vm3, %v2782_v44 }
 0x36f   : > { %1934 = vmatprep.mubr.bf16.mxu1 %v2967_v0 }
 0x376   : > { %2600 = vmatmul.mubr.msk.bf16.gmra.mxu1 %vm1853_vm3, %v2783_v30 }
 0x377   : > { %2196 = vmatprep.mubr.bf16.mxu1 %v2967_v0 }
 0x41e   : > { %v1906_v51 = vpop.f32.mrf.mxu1 }
 0x41f   : > { %v1907_v22 = vadd.f32 %v1906_v51, %v1796_v27  ;;  %v2785_v51 = vld [vmem:[%s3692_s14 + $0x8] sm:$0xff]  }
 0x420   : > { %v1908_v48 = vpop.f32.mrf.mxu1 }
 0x421   : > { %v1909_v14 = vadd.f32 %v1908_v48, %v1796_v27  ;;  %v2784_v48 = vld [vmem:[%s3692_s14] sm:$0xff]  }
 0x422   : > { %v1910_v60 = vpop.f32.mrf.mxu1 }
 0x423   : > { %v1911_v2 = vadd.f32 %v1910_v60, %v1801_v19  ;;  %v1946_v31 = vmax.f32 %v1909_v14, 0.0  ;;  %v2786_v60 = vld [vmem:[%s3692_s14 + $0x10] sm:$0xff]  }
 0x424   : > { %v1912_v32 = vpop.f32.mrf.mxu1 }
 0x425   : > { %v1913_v39 = vadd.f32 %v1912_v32, %v1801_v19  ;;  %v1947_v49 = vmax.f32 %v1911_v2, 0.0  ;;  %v1945_v32 = vmax.f32 %v1907_v22, 0.0 }
 0x426   : > { %v1916_v10 = vpop.f32.mrf.mxu1 }
 0x427   : > { %v1917_v43 = vadd.f32 %v1916_v10, %v1806_v5  ;;  %v1948_v29 = vmax.f32 %v1913_v39, 0.0  ;;  %v1961_v10 = vpack.c.bf16 %v1947_v49, %v1945_v32 }
 0x428   : > { %v1918_v53 = vpop.f32.mrf.mxu1 }
 0x429   : > { %v1919_v4 = vadd.f32 %v1918_v53, %v1806_v5  ;;  %v1949_v18 = vmax.f32 %v1917_v43, 0.0  ;;  %v1962_v30 = vpack.c.bf16 %v1948_v29, %v1946_v31  ;;  %v2787_v53 = vld [vmem:[%s3692_s14 + $0x18] sm:$0xff]  }
 0x42a   : > { %v1920_v58 = vpop.f32.mrf.mxu1 }
 0x42b   : > { %v1921_v25 = vadd.f32 %v1920_v58, %v1811_v9  ;;  %v1950_v1 = vmax.f32 %v1919_v4, 0.0 }
 0x42c   : > { %v1922_v33 = vpop.f32.mrf.mxu1 }
 0x42d   : > { %v1923_v55 = vadd.f32 %v1922_v33, %v1811_v9  ;;  %v1951_v59 = vmax.f32 %v1921_v25, 0.0 }
 0x42e   : > { %v1926_v34 = vpop.f32.mrf.mxu1 }
 0x42f   : > { %v1927_v23 = vadd.f32 %v1926_v34, %v1816_v63  ;;  %v1952_v26 = vmax.f32 %v1923_v55, 0.0  ;;  %v1963_v44 = vpack.c.bf16 %v1951_v59, %v1949_v18 }
 0x430   : > { %v1928_v56 = vpop.f32.mrf.mxu1 }
 0x431   : > { %v1929_v6 = vadd.f32 %v1928_v56, %v1816_v63  ;;  %v1953_v28 = vmax.f32 %v1927_v23, 0.0  ;;  %v1964_v47 = vpack.c.bf16 %v1952_v26, %v1950_v1 }
 0x432   : > { %v1930_v13 = vpop.f32.mrf.mxu1 }
 0x433   : > { %v1931_v3 = vadd.f32 %v1930_v13, %v1821_v57  ;;  %v1954_v24 = vmax.f32 %v1929_v6, 0.0 }
 0x434   : > { %v1932_v46 = vpop.f32.mrf.mxu1 }
 0x435   : > { %v1933_v12 = vadd.f32 %v1932_v46, %v1821_v57  ;;  %v1955_v41 = vmax.f32 %v1931_v3, 0.0 }
 0x436   : > { %v1936_v50 = vpop.f32.mrf.mxu1 }
 0x437   : > { %v1937_v61 = vadd.f32 %v1936_v50, %v1826_v36  ;;  %v1956_v11 = vmax.f32 %v1933_v12, 0.0  ;;  %v1965_v42 = vpack.c.bf16 %v1955_v41, %v1953_v28  ;;  %v2023_v50 = vpop.permute.xlu0 %2022 }
 0x438   : > { %v1938_v52 = vpop.f32.mrf.mxu1 }
 0x439   : > { %v1939_v8 = vadd.f32 %v1938_v52, %v1826_v36  ;;  %v1957_v62 = vmax.f32 %v1937_v61, 0.0  ;;  %v1966_v7 = vpack.c.bf16 %v1956_v11, %v1954_v24  ;;  %v2018_v52 = vpop.permute.xlu1 %2017 }
 0x43a   : > { %v1940_v15 = vpop.f32.mrf.mxu1 }
 0x43b   : > { %v1941_v40 = vadd.f32 %v1940_v15, %v1831_v35  ;;  %v1958_v16 = vmax.f32 %v1939_v8, 0.0  ;;  %v2013_v8 = vpop.permute.xlu0 %2012 }
 0x43c   : > { %v1942_v38 = vpop.f32.mrf.mxu1 }
 0x43d   : > { %v1943_v54 = vadd.f32 %v1942_v38, %v1831_v35  ;;  %v1959_v37 = vmax.f32 %v1941_v40, 0.0  ;;  %v2008_v9 = vpop.permute.xlu1 %2007 }
 0x43f   : > { %v1960_v20 = vmax.f32 %v1943_v54, 0.0  ;;  %v1967_v17 = vpack.c.bf16 %v1959_v37, %v1957_v62  ;;  %v2003_v5 = vpop.permute.xlu0 %2002 }
 0x441   : > { %v1968_v45 = vpack.c.bf16 %v1960_v20, %v1958_v16  ;;  %v1998_v16 = vpop.permute.xlu1 %1997 }
 0x443   : > { %2065 = vmatprep.subr.bf16.mxu0 %v1968_v45  ;;  %v1993_v26 = vpop.permute.xlu0 %1992 }
 0x444   : > { %2066 = vmatpush1.bf16.msra.mxu0 %v1967_v17 }
 0x445   : > { %2067 = vmatprep.subr.bf16.mxu0 %v1966_v7  ;;  %v1988_v2 = vpop.permute.xlu1 %1987 }
 0x448   : > { %2068 = vmatpush1.bf16.msra.mxu0 %v1965_v42 }
 0x449   : > { %2069 = vmatprep.subr.bf16.mxu0 %v1964_v47 }
 0x44c   : > { %2070 = vmatpush1.bf16.msra.mxu0 %v1963_v44 }
 0x44d   : > { %2071 = vmatprep.subr.bf16.mxu0 %v1962_v30 }
 0x450   : > { %2072 = vmatpush1.bf16.msra.mxu0 %v1961_v10 }
 0x453   : > { %2605 = vmatmul.mubr.msk.bf16.vlgmr.msra.gmra.mxu0 %vm1061_vm0, %v2784_v48 }
 0x454   : > { %2099 = vmatprep.mubr.bf16.mxu0 %v2967_v0 }
 0x45b   : > { %2606 = vmatmul.mubr.msk.bf16.gmra.mxu0 %vm1061_vm0, %v2785_v51 }
 0x45c   : > { %2109 = vmatprep.mubr.bf16.mxu0 %v2967_v0 }
 0x463   : > { %2607 = vmatmul.mubr.msk.bf16.gmra.mxu0 %vm1061_vm0, %v2786_v60 }
 0x464   : > { %2119 = vmatprep.mubr.bf16.mxu0 %v2967_v0 }
 0x46b   : > { %2608 = vmatmul.mubr.msk.bf16.gmra.mxu0 %vm1061_vm0, %v2787_v53 }
 0x46c   : > { %2247 = vmatprep.mubr.bf16.mxu0 %v2967_v0 }
 0x513   : > { %v2091_v58 = vpop.f32.mrf.mxu0 }
 0x514   : > { %v2092_v30 = vadd.f32 %v2091_v58, %v1988_v2  ;;  %v2154_v58 = vld [vmem:[%s3754_s23] sm:$0x1]  ;;  %s3757_s23 = sld [smem:[#allocation32_spill]] }
 0x515   : > { %v2093_v33 = vpop.f32.mrf.mxu0 }
 0x516   : > { %v2094_v29 = vadd.f32 %v2093_v33, %v1988_v2  ;;  %v2130_v53 = vmax.f32 %v2092_v30, 0.0 }
 0x517   : > { %v2095_v34 = vpop.f32.mrf.mxu0 }
 0x518   : > { %v2096_v22 = vadd.f32 %v2095_v34, %v1993_v26  ;;  %v2131_v10 = vmax.f32 %v2094_v29, 0.0  ;;  %v2205_v34 = vld [vmem:[%s3755_s24] sm:$0x1]  ;;  %s2852_s24 = scalar_lea.vmem %s2356_s20, 128 }
 0x519   : > { %v2097_v35 = vpop.f32.mrf.mxu0  ;;  %p2853_p12 = scmp.ne.s32.totalorder %s2356_s20, %s2852_s24  ;;  %p2860_p5 = scmp.lt.s32.totalorder %s2858_s7, %s2852_s24 }
 0x51a   : > { %v2098_v28 = vadd.f32 %v2097_v35, %v1993_v26  ;;  %v2132_v48 = vmax.f32 %v2096_v22, 0.0  ;;  %v2968_v35 = vmov 0.0   ;;  %s2353_s3 = scalar_lea.hbm %s3757_s23, %s3714_s16 }
 0x51b   : > { %v2101_v56 = vpop.f32.mrf.mxu0  ;;  %770 = vst [vmem:[#allocation2] sm:$0xf] %v2968_v35  ;;  %p2854_p0 = pnand %p2853_p12, %p3133_p9  ;;  %p2861_p6 = por %p2860_p5, %p2859_p3 }
 0x51c   : > { %v2102_v59 = vadd.f32 %v2101_v56, %v1998_v16  ;;  %v2133_v49 = vmax.f32 %v2098_v28, 0.0  ;;  %v2146_v33 = vpack.c.bf16 %v2132_v48, %v2130_v53  ;;  %v2210_v56 = vpop.permute.xlu1 %2209 }
 0x51d   : > { %v2103_v36 = vpop.f32.mrf.mxu0  ;;  %p2855_p1 = pneg %p2854_p0 }
 0x51e   : > { %v2104_v41 = vadd.f32 %v2103_v36, %v1998_v16  ;;  %v2134_v32 = vmax.f32 %v2102_v59, 0.0  ;;  %v2147_v60 = vpack.c.bf16 %v2133_v49, %v2131_v10 }
 0x51f   : > { %v2105_v13 = vpop.f32.mrf.mxu0  ;;  %p2862_p4 = pnand %p2861_p6, %p2855_p1 }
 0x520   : > { %v2106_v7 = vadd.f32 %v2105_v13, %v2003_v5  ;;  %v2135_v47 = vmax.f32 %v2104_v41, 0.0  ;;  %v2969_v41 = vmov 1983009808  }
 0x521   : > { %v2107_v46 = vpop.f32.mrf.mxu0 }
 0x522   : > { %v2108_v62 = vadd.f32 %v2107_v46, %v2003_v5  ;;  %v2136_v18 = vmax.f32 %v2106_v7, 0.0  ;;  %v2270_v59 = vld [vmem:[#allocation2] sm:$0xf] }
 0x523   : > { %v2111_v57 = vpop.f32.mrf.mxu0 }
 0x524   : > { %v2112_v19 = vadd.f32 %v2111_v57, %v2008_v9  ;;  %v2137_v14 = vmax.f32 %v2108_v62, 0.0  ;;  %v2148_v51 = vpack.c.bf16 %v2136_v18, %v2134_v32 }
 0x525   : > { %v2113_v63 = vpop.f32.mrf.mxu0 }
 0x526   : > { %v2114_v55 = vadd.f32 %v2113_v63, %v2008_v9  ;;  %v2138_v42 = vmax.f32 %v2112_v19, 0.0  ;;  %v2149_v44 = vpack.c.bf16 %v2137_v14, %v2135_v47 }
 0x527   : > { %v2115_v15 = vpop.f32.mrf.mxu0 }
 0x528   : > { %v2116_v20 = vadd.f32 %v2115_v15, %v2013_v8  ;;  %v2139_v17 = vmax.f32 %v2114_v55, 0.0 }
 0x529   : > { %v2117_v12 = vpop.f32.mrf.mxu0 }
 0x52a   : > { %v2118_v0 = vadd.f32 %v2117_v12, %v2013_v8  ;;  %v2140_v27 = vmax.f32 %v2116_v20, 0.0 }
 0x52b   : > { %v2121_v40 = vpop.f32.mrf.mxu0 }
 0x52c   : > { %v2122_v3 = vadd.f32 %v2121_v40, %v2018_v52  ;;  %v2141_v4 = vmax.f32 %v2118_v0, 0.0  ;;  %v2150_v31 = vpack.c.bf16 %v2140_v27, %v2138_v42 }
 0x52d   : > { %v2123_v61 = vpop.f32.mrf.mxu0 }
 0x52e   : > { %v2124_v6 = vadd.f32 %v2123_v61, %v2018_v52  ;;  %v2142_v25 = vmax.f32 %v2122_v3, 0.0  ;;  %v2151_v1 = vpack.c.bf16 %v2141_v4, %v2139_v17  ;;  %v2159_v3 = vpop.permute.xlu1 %2158  ;;  %v2279_v17 = vunpack.c.l.s4 %v2969_v41 }
 0x52f   : > { %v2125_v38 = vpop.f32.mrf.mxu0 }
 0x530   : > { %v2126_v54 = vadd.f32 %v2125_v38, %v2023_v50  ;;  %v2143_v24 = vmax.f32 %v2124_v6, 0.0  ;;  %v2280_v26 = vunpack.c.0.s8 %v2279_v17 }
 0x531   : > { %v2127_v37 = vpop.f32.mrf.mxu0 }
 0x532   : > { %v2128_v11 = vadd.f32 %v2127_v37, %v2023_v50  ;;  %v2144_v23 = vmax.f32 %v2126_v54, 0.0 }
 0x534   : > { %v2145_v45 = vmax.f32 %v2128_v11, 0.0  ;;  %v2152_v43 = vpack.c.bf16 %v2144_v23, %v2142_v25 }
 0x536   : > { %v2153_v39 = vpack.c.bf16 %v2145_v45, %v2143_v24 }
 0x538   : > { %2172 = vmatprep.subr.bf16.mxu1 %v2153_v39  ;;  %2223 = vmatprep.subr.bf16.mxu0 %v2153_v39  ;;  %v2281_v39 = vlaneseq }
 0x539   : > { %2173 = vmatpush1.bf16.msra.mxu1 %v2152_v43  ;;  %2224 = vmatpush1.bf16.msra.mxu0 %v2152_v43 }
 0x53a   : > { %2174 = vmatprep.subr.bf16.mxu1 %v2151_v1  ;;  %2225 = vmatprep.subr.bf16.mxu0 %v2151_v1  ;;  %v2282_v7 = vshrl.u32 %v2281_v39, 7 }
 0x53c   : > { %v2283_v1 = vsub.s32 %v2280_v26, %v2282_v7 }
 0x53d   : > { %2175 = vmatpush1.bf16.msra.mxu1 %v2150_v31  ;;  %2226 = vmatpush1.bf16.msra.mxu0 %v2150_v31 }
 0x53e   : > { %2176 = vmatprep.subr.bf16.mxu1 %v2149_v44  ;;  %2227 = vmatprep.subr.bf16.mxu0 %v2149_v44 }
 0x541   : > { %2177 = vmatpush1.bf16.msra.mxu1 %v2148_v51  ;;  %2228 = vmatpush1.bf16.msra.mxu0 %v2148_v51 }
 0x542   : > { %2178 = vmatprep.subr.bf16.mxu1 %v2147_v60  ;;  %2229 = vmatprep.subr.bf16.mxu0 %v2147_v60 }
 0x545   : > { %2179 = vmatpush1.bf16.msra.mxu1 %v2146_v33  ;;  %2230 = vmatpush1.bf16.msra.mxu0 %v2146_v33 }
 0x548   : > { %2609 = vmatmul.mubr.msk.bf16.vlgmr.msra.gmra.mxu1 %vm1061_vm0, %v2154_v58  ;;  %2610 = vmatmul.mubr.msk.bf16.vlgmr.msra.gmra.mxu0 %vm1061_vm0, %v2205_v34 }
 0x608   : > { %v2198_v36 = vpop.f32.mrf.mxu1  ;;  %v2249_v13 = vpop.f32.mrf.mxu0 }
 0x609   : > { %v2250_v46 = vadd.f32 %v2249_v13, %v2210_v56  ;;  %v2199_v55 = vadd.f32 %v2198_v36, %v2159_v3 }
 0x60a   : > { %v2200_v57 = vpop.f32.mrf.mxu1  ;;  %v2251_v50 = vpop.f32.mrf.mxu0 }
 0x60b   : > { %v2256_v63 = vsub.f32 0.0, %v2250_v46  ;;  %v2252_v52 = vadd.f32 %v2251_v50, %v2210_v56  ;;  %v2201_v37 = vadd.f32 %v2200_v57, %v2159_v3 }
 0x60c   : > { %v2253_v15 = vpop.f32.mrf.mxu0  ;;  %v2202_v12 = vpop.f32.mrf.mxu1 }
 0x60d   : > { %v2258_v8 = vmul.f32 1.442695, %v2256_v63  ;;  %v2257_v40 = vsub.f32 0.0, %v2252_v52  ;;  %v2290_v11 = vcombine.low %v2199_v55, %v2201_v37 }
 0x60e   : > { %v2254_v9 = vpop.f32.mrf.mxu0  ;;  %v2203_v61 = vpop.f32.mrf.mxu1 }
 0x60f   : > { %2812 = vpow2.f32 %v2258_v8  ;;  %v2260_v38 = vmul.f32 1.442695, %v2257_v40  ;;  %v2291_v62 = vrot.slane %v2290_v11, 6 }
 0x611   : > { %2814 = vpow2.f32 %v2260_v38  ;;  %v2293_v45 = vadd.f32 %v2291_v62, %v3206_v21 }
 0x61c   : > { %v2813_v0 = vpop.eup %2812 }
 0x61d   : > { %v2262_v6 = vadd.f32 1.0, %v2813_v0 }
 0x61e   : > { %v2815_v54 = vpop.eup %2814 }
 0x61f   : > { %2816 = vrcp.f32 %v2262_v6  ;;  %v2263_v5 = vadd.f32 1.0, %v2815_v54 }
 0x621   : > { %2818 = vrcp.f32 %v2263_v5 }
 0x62c   : > { %v2817_v16 = vpop.eup %2816 }
 0x62d   : > { %v2268_v20 = vadd.f32 0.0001, %v2817_v16 }
 0x62e   : > { %v2819_v23 = vpop.eup %2818 }
 0x62f   : > { %2820 = vlog2.f32 %v2268_v20  ;;  %v2269_v4 = vadd.f32 0.0001, %v2819_v23 }
 0x631   : > { %2822 = vlog2.f32 %v2269_v4  ;;  %v2296_v24 = vcombine.low %v2268_v20, %v2269_v4 }
 0x633   : > { %v2297_v19 = vrot.slane %v2296_v24, 6 }
 0x635   : > { %v2299_v25 = vmul.f32 %v2297_v19, %v2293_v45 }
 0x637   : > { %2301 = vst [vmem:[%s3603_s0] sm:$0xcc] %v2299_v25 }
 0x63c   : > { %v2821_v27 = vpop.eup %2820 }
 0x63d   : > { %v2272_v28 = vmul.f32 0.6931472, %v2821_v27 }
 0x63e   : > { %v2823_v43 = vpop.eup %2822 }
 0x63f   : > { %v2274_v14 = vmul.f32 0.6931472, %v2823_v43 }
 0x641   : > { %v2277_v2 = vcombine.low %v2272_v28, %v2274_v14 }
 0x643   : > { %v2284_v21 = vrot.slane %v2277_v2, %v2283_v1 }
 0x645   : > { %v2286_v42 = vadd.f32 %v2284_v21, %v2270_v59 }
 0x647   : > { %2287 = vst [vmem:[#allocation2] sm:$0xf] %v2286_v42 }
 0x64e   : > { %v2611_v29 = vld.sshfl [vmem:[#allocation2] sm:$0x33 pattern:$0x76325410] }
 0x64f   : > { %v2314_v47 = vcombine.high %v2611_v29, %v2611_v29  ;;  %v2318_v22 = vsel %vm2317_vm4, %v2611_v29, 0.0 }
 0x651   : > { %v2319_v18 = vsel %vm2317_vm4, %v2314_v47, 0.0 }
 0x652   : > { %v2320_v31 = vadd.f32 %v2319_v18, %v2318_v22 }
 0x654   : > { %2321 = vadd.xlane.f32.xlu0 %v2320_v31 }
 0x655   : > { %2865 = shalt.err (!%p2862_p4)
}
 0x656   : > { %s2866_s0 = scalar_lea.hbm %s2353_s3, 128  ;;  %s2870_s16 = scalar_lea.hbm %s3757_s23, 256 }
 0x657   : > { %p2867_p7 = scmp.ne.s32.totalorder %s2353_s3, %s2866_s0  ;;  %p2871_p2 = scmp.lt.s32.totalorder %s2353_s3, %s3757_s23 }
 0x658   : > { %p2872_p8 = scmp.lt.s32.totalorder %s2870_s16, %s2866_s0 }
 0x659   : > { %p2868_p10 = pnand %p2867_p7, %p3133_p9 }
 0x65a   : > { %p2873_p12 = por %p2872_p8, %p2871_p2 }
 0x65b   : > { %p2869_p13 = pneg %p2868_p10 }
 0x65d   : > { %p2874_p0 = pnand %p2873_p12, %p2869_p13 }
 0x65f   : > { %2877 = shalt.err (!%p2874_p0)
}
 0x660   : > { %2628 = dma.vmem_to_hbm [thread:$0]  (%p3133_p9), %s2356_s20, 128, %s2353_s3, %s2333_s1  }
 0x661   : > { %s3758_s6 = sshll.u32 %s3166_s4, 3  ;;  %s3759_s22 = sshll.u32 %s2954_s27, 7 }
 0x662   : > { %s748_s7 = scalar_lea.vmem [#allocation7], %s3758_s6  ;;  %s3760_s3 = sld [smem:[#allocation33_spill]] }
 0x663   : > { %s2369_s8 = sshll.u32 %s748_s7, 4  ;;  %s2338_s0 = scalar_lea.sflag [#allocation8], %s3166_s4  ;;  %s3631_s8 = int_to_ptr.vmem [resolvable:$true] %s2369_s8 }
 0x664   : > { %s2878_s26 = scalar_lea.vmem %s3631_s8, 128  ;;  %s2971_s2 = smov [#allocation7]  }
 0x665   : > { %p2879_p1 = scmp.ne.s32.totalorder %s3631_s8, %s2878_s26  ;;  %s2882_s6 = sshll.u32 %s2971_s2, 4  ;;  %s2883_s6 = int_to_ptr.vmem [resolvable:$false] %s2882_s6 }
 0x666   : > { %s2884_s10 = scalar_lea.vmem %s2883_s6, 256  ;;  %p2885_p6 = scmp.lt.s32.totalorder %s3631_s8, %s2883_s6 }
 0x667   : > { %p2880_p3 = pnand %p2879_p1, %p3133_p9  ;;  %p2886_p4 = scmp.lt.s32.totalorder %s2884_s10, %s2878_s26 }
 0x668   : > { %s3761_s1 = smov %s3760_s3  ;;  %s2367_s24 = scalar_lea.hbm %s3760_s3, %s3759_s22 }
 0x669   : > { %p2881_p5 = pneg %p2880_p3  ;;  %p2887_p7 = por %p2886_p4, %p2885_p6 }
 0x66b   : > { %p2888_p10 = pnand %p2887_p7, %p2881_p5 }
 0x6dd   : > { %v2322_v49 = vpop.xlane.xlu0 %2321 }
 0x6de   : > { %v2323_v44 = vrot.slane %v2322_v49, 4 }
 0x6e0   : > { %v2324_v30 = vadd.f32 %v2323_v44, %v2322_v49 }
 0x6e2   : > { %v2325_v32 = vrot.slane %v2324_v30, 2 }
 0x6e4   : > { %v2326_v10 = vadd.f32 %v2325_v32, %v2324_v30 }
 0x6e6   : > { %v2327_v48 = vrot.slane %v2326_v10, 1 }
 0x6e8   : > { %v2328_v51 = vadd.f32 %v2327_v48, %v2326_v10 }
 0x6ea   : > { %2624 = vpush %v2328_v51 }
 0x71b   : > { %s2625_s9 = spop %2624 }
 0x71c   : > { %v2330_v60 = vstv %s2625_s9 }
 0x71d   : > { %2331 = vst [vmem:[%s748_s7] sm:$0xff] %v2330_v60 }
 0x71e   : > { %2891 = shalt.err (!%p2888_p10)
}
 0x71f   : > { %s2892_s27 = scalar_lea.hbm %s2367_s24, 128  ;;  %s2896_s9 = scalar_lea.hbm %s3761_s1, 256 }
 0x720   : > { %p2893_p13 = scmp.ne.s32.totalorder %s2367_s24, %s2892_s27  ;;  %p2897_p12 = scmp.lt.s32.totalorder %s2367_s24, %s3761_s1 }
 0x721   : > { %p2898_p0 = scmp.lt.s32.totalorder %s2896_s9, %s2892_s27 }
 0x722   : > { %p2894_p2 = pnand %p2893_p13, %p3133_p9 }
 0x723   : > { %p2899_p1 = por %p2898_p0, %p2897_p12 }
 0x724   : > { %p2895_p8 = pneg %p2894_p2 }
 0x726   : > { %p2900_p3 = pnand %p2899_p1, %p2895_p8 }
 0x728   : > { %2903 = shalt.err (!%p2900_p3)
}
 0x729   : > { %2629 = dma.vmem_to_hbm [thread:$0]  (%p3133_p9), %s3631_s8, 128, %s2367_s24, %s2338_s0  }
 0x72a PF: > { %s3762_s10 = sld [smem:[#allocation12_spill]]  ;;  %p3764_p5 = scmp.ge.s32.totalorder %s2962_s28, 2 }
 0x72c   : > { %p2637_p6 = pnand %p3764_p5, %p3140_p11 }
 0x72e   : > { %p2638_p4 = pneg %p2637_p6 }
 0x730   : > { %s2381_s3 = sand.u32 1, %s3762_s10  }
 0x731   : > { %s2382_s26 = scalar_lea.sflag [#allocation5], %s2381_s3 }
 0x732   : > { %2933 = dma.done.wait (%p2638_p4), %s2382_s26, 128  }
 0x733   : > { %2935 = vsyncadd (%p2638_p4), %s2382_s26, 4294967168  ;;  %s2391_s2 = scalar_lea.sflag [#allocation8], %s2381_s3 }
 0x734   : > { %2937 = dma.done.wait (%p2638_p4), %s2391_s2, 128  }
 0x735   : > { %2939 = vsyncadd (%p2638_p4), %s2391_s2, 4294967168  ;;  %s41_s28 = sadd.s32 1, %s2962_s28   ;;  %s3765_s5 = sld [smem:[#allocation13_spill]] }
 0x736   : > { %p38_p7 = scmp.ge.s32.totalorder %s41_s28, 4   ;;  %s3766_s26 = sld [smem:[#allocation17_spill]] }
 0x737   : > { %s3767_s27 = sld [smem:[#allocation14_spill]]  ;;  %s3769_s2 = smov %s2946_s25 }
 0x738   : > { %s3768_s3 = sld [smem:[#allocation15_spill]]  ;;  %40 = sbr.rel (!%p38_p7) target bundleno = 24 (0x18), region = 173 }
 0x73b   : > { %s3770_s25 = smov %s3765_s5 }
 0x73d   :  { %2396 = vsyncpa [#allocation4], 1 }
 0x73e   :  { %2398 = vsyncpa [#allocation4 + $0x1], 1 }
 0x73f   :  { %2399 = vsyncpa [#allocation5], 1 }
 0x740   :  { %2401 = vsyncpa [#allocation5 + $0x1], 1 }
 0x741   :  { %2402 = vsyncpa [#allocation8], 1 }
 0x742   :  { %2404 = vsyncpa [#allocation8 + $0x1], 1 }

</bundles_post_ra>
